<compile_context>
chip_gen: v6e
topology: v6e:2x2x1
jax: 0.10.0
libtpu: 0.0.40
codegen_flags: <defaults>
</compile_context>

<pallas_src>
import jax
import jax.numpy as jnp
from jax.experimental import pallas as pl
from jax.experimental.pallas import tpu as pltpu

LN_EPS = 1e-5


# --------------------------------------------------------------------------- #
# Small utilities
# --------------------------------------------------------------------------- #
def _vmem_capacity_bytes():
    """Physical VMEM of the current chip (conservative 64 MiB fallback)."""
    try:
        info = pltpu.get_tpu_info()
        for name in ("vmem_capacity_bytes", "vmem_size_bytes", "vmem_bytes"):
            v = getattr(info, name, None)
            if v:
                return int(v)
    except Exception:
        pass
    return 64 * 2 ** 20          # v7x per-TensorCore VMEM


def _vmem_limit(need_bytes, cap_bytes):
    return int(min(int(0.85 * cap_bytes), max(int(need_bytes), 16 * 2 ** 20)))


def _const_spec(shape, single_buffered):
    """Replicated (constant index) operand; optionally single-buffered."""
    zero = (0,) * len(shape)
    index_map = lambda *_: zero
    if single_buffered:
        return pl.BlockSpec(shape, index_map, pipeline_mode=pl.Buffered(1))
    return pl.BlockSpec(shape, index_map)


def _run_with_fallback(build):
    """Prefer single-buffered constants; retry with default buffering on failure."""
    try:
        return build(True)
    except Exception:
        return build(False)


def _build_selector(k, W):
    """0/1 matrix S so that (row-grouped high) @ S is the 2x nearest upsample.

    With k full-resolution rows packed along lanes, S[i, j] = 1 iff
    i == ((j // W) // 2) * (W // 2) + (j % W) // 2,  i in [0, k*W//4), j in [0, k*W).
    """
    W2 = W // 2
    rows, cols = (k // 2) * W2, k * W
    i = jax.lax.broadcasted_iota(jnp.int32, (rows, cols), 0)
    j = jax.lax.broadcasted_iota(jnp.int32, (rows, cols), 1)
    src = (j // W // 2) * W2 + (j % W) // 2
    return (i == src).astype(jnp.float32)


def _work_dtype(dt):
    return jnp.bfloat16 if dt == jnp.bfloat16 else jnp.float32


# --------------------------------------------------------------------------- #
# In-kernel building blocks
# --------------------------------------------------------------------------- #
def _fusion_tile(low, high2, sel):
    """low: (C, G, KW) I/O dtype; high2: (C*G, KW//4); sel: (KW//4, KW) 0/1.

    Returns fusion = low * nearest_upsample(high) in the work dtype.  The W
    repeat + row duplication runs as one small selection matmul on the
    otherwise-idle MXU; the (C*G, KW) -> (C, G, KW) reshape is layout-free
    because G (or the spatial tile) is a multiple of 8.
    """
    C, G, KW = low.shape
    wdt = _work_dtype(low.dtype)
    # bf16 operands are exactly representable -> default MXU precision is exact;
    # f32 needs HIGHEST (multi-pass emulation) to stay ~ulp-exact.
    prec = None if high2.dtype == jnp.bfloat16 else jax.lax.Precision.HIGHEST
    up = jnp.dot(high2, sel, preferred_element_type=jnp.float32, precision=prec)
    up = up.reshape(C, G, KW).astype(wdt)
    return low.astype(wdt) * up


def _channel_mlp(ctx, rowvec, colvec, w_ref):
    """Both FEABlock 1x1-conv branches applied to a (C, 1) context vector.

    Implemented as VPU broadcast-multiplies + XLU reduces (exact f32): avoids
    four serialized N=1 MXU matvecs and their result-FIFO latency.
      rowvec: (6, C) = [b1_mul, b1_add, ln_w_mul, ln_w_add, ln_b_mul, ln_b_add]
      colvec: (C, 3) = [conv_mask_w, b2_mul, b2_add]
      w_ref : (4, C, C) = [W1_mul^T, W1_add^T, W2_mul, W2_add]
    """
    h_mul = jnp.sum(w_ref[0] * ctx, axis=0, keepdims=True) + rowvec[0:1]   # (1, C)
    h_add = jnp.sum(w_ref[1] * ctx, axis=0, keepdims=True) + rowvec[1:2]   # (1, C)
    h = jnp.concatenate([h_mul, h_add], axis=0)                            # (2, C)
    mu = jnp.mean(h, axis=1, keepdims=True)
    var = jnp.mean((h - mu) ** 2, axis=1, keepdims=True)   # biased, like torch LN
    hn = (h - mu) * jax.lax.rsqrt(var + LN_EPS) * rowvec[2:4] + rowvec[4:6]
    hr = jnp.maximum(hn, 0.0)                                              # (2, C)
    mul = jax.nn.sigmoid(jnp.sum(w_ref[2] * hr[0:1], axis=1, keepdims=True)
                         + colvec[:, 1:2])                                 # (C, 1)
    add = jnp.sum(w_ref[3] * hr[1:2], axis=1, keepdims=True) + colvec[:, 2:3]
    return mul, add


# --------------------------------------------------------------------------- #
# Kernels
# --------------------------------------------------------------------------- #
def _decoder_kernel(low_ref, high_ref, sel_ref, rowvec_ref, colvec_ref, w_ref,
                    out_ref):
    """Monolithic per-batch kernel: upsample, fusion, att-pool, MLP, epilogue."""
    fusion = _fusion_tile(low_ref[0], high_ref[0], sel_ref[...])   # (C, G, KW)
    colvec = colvec_ref[...]                                       # (C, 3) f32

    # Attention spatial pool.  conv_mask bias dropped (softmax shift-invariant);
    # softmax normalization folded into ctx, p never materialized.
    wm = colvec[:, 0:1].astype(fusion.dtype)[:, :, None]           # (C, 1, 1)
    logits = jnp.sum(fusion * wm, axis=0, dtype=jnp.float32)       # (G, KW)
    m = jnp.max(jnp.max(logits, axis=1, keepdims=True), axis=0, keepdims=True)
    e = jnp.exp(logits - m)
    s = jnp.sum(jnp.sum(e, axis=1, keepdims=True), axis=0, keepdims=True)
    num = jnp.sum(jnp.sum(fusion * e[None, :, :], axis=2, keepdims=True), axis=1)
    ctx = num * (1.0 / s)                                          # (C, 1) f32

    mul, add = _channel_mlp(ctx, rowvec_ref[...], colvec, w_ref)
    out_ref[0] = (fusion * mul.astype(fusion.dtype)[:, :, None]
                  + add.astype(fusion.dtype)[:, :, None]).astype(out_ref.dtype)


def _ctx_mlp_kernel(low_ref, high_ref, sel_ref, rowvec_ref, colvec_ref, w_ref,
                    mad_ref, m_sc, s_sc, num_sc):
    """Tiled pass 1: online-softmax spatial pool + channel MLP at the last tile.

    Grid (B, n_tiles); the tile axis is 'arbitrary' and carries the running
    max / exp-sum / ctx-numerator in VMEM scratch.  Output is (B, C, 2) holding
    [sigmoid(channel_mul), channel_add] per batch/channel.
    """
    t = pl.program_id(1)

    @pl.when(t == 0)
    def _():
        m_sc[...] = jnp.full_like(m_sc, -jnp.inf)
        s_sc[...] = jnp.zeros_like(s_sc)
        num_sc[...] = jnp.zeros_like(num_sc)

    low = low_ref[0]                                    # (C, Tg, KW)
    C, Tg, KW = low.shape
    high2 = high_ref[0].reshape(C * Tg, KW // 4)        # layout-free: Tg % 8 == 0
    fusion = _fusion_tile(low, high2, sel_ref[...])
    colvec = colvec_ref[...]

    wm = colvec[:, 0:1].astype(fusion.dtype)[:, :, None]
    logits = jnp.sum(fusion * wm, axis=0, dtype=jnp.float32)        # (Tg, KW)
    m_tile = jnp.max(jnp.max(logits, axis=1, keepdims=True), axis=0, keepdims=True)
    m_old = m_sc[...]
    m_new = jnp.maximum(m_old, m_tile)
    alpha = jnp.exp(m_old - m_new)                                   # (1, 1)
    e = jnp.exp(logits - m_new)
    s_sc[...] = alpha * s_sc[...] + jnp.sum(jnp.sum(e, axis=1, keepdims=True),
                                            axis=0, keepdims=True)
    part = jnp.sum(jnp.sum(fusion * e[None, :, :], axis=2, keepdims=True), axis=1)
    num_sc[...] = alpha * num_sc[...] + part
    m_sc[...] = m_new

    @pl.when(t == pl.num_programs(1) - 1)
    def _():
        ctx = num_sc[...] * (1.0 / s_sc[...])                        # (C, 1)
        mul, add = _channel_mlp(ctx, rowvec_ref[...], colvec, w_ref)
        mad_ref[0] = jnp.concatenate([mul, add], axis=1).astype(mad_ref.dtype)


def _apply_kernel(low_ref, high_ref, sel_ref, mad_ref, out_ref):
    """Tiled pass 2 (fully parallel): out = fusion * mul + add, fusion recomputed."""
    low = low_ref[0]                                    # (C, Tg, KW)
    C, Tg, KW = low.shape
    high2 = high_ref[0].reshape(C * Tg, KW // 4)
    fusion = _fusion_tile(low, high2, sel_ref[...])
    mad = mad_ref[0]                                    # (C, 2) f32
    mul = mad[:, 0:1].astype(fusion.dtype)[:, :, None]
    add = mad[:, 1:2].astype(fusion.dtype)[:, :, None]
    out_ref[0] = (fusion * mul + add).astype(out_ref.dtype)


# --------------------------------------------------------------------------- #
# Parameters / wrapper / reference
# --------------------------------------------------------------------------- #
def make_params(ch, key):
    """Deterministic synthetic parameters matching the PyTorch module shapes."""
    ks = jax.random.split(key, 14)
    f32 = jnp.float32

    def nrm(k, shape, scale=0.2):
        return (scale * jax.random.normal(k, shape)).astype(f32)

    params = {
        # conv_mask: Conv2d(ch, 1, 1) -> weight (1, ch, 1, 1), bias (1,)
        "wm": nrm(ks[0], (1, ch)),
        "bm": nrm(ks[1], (1, 1)),
    }
    for i, pfx in enumerate(("m", "a")):   # channel_mul / channel_add branches
        o = 2 + i * 6
        params[pfx + "w1"] = nrm(ks[o + 0], (ch, ch))          # Conv2d(ch, ch, 1)
        params[pfx + "b1"] = nrm(ks[o + 1], (ch, 1))
        params[pfx + "lw"] = (1.0 + nrm(ks[o + 2], (ch, 1)))   # LayerNorm weight
        params[pfx + "lb"] = nrm(ks[o + 3], (ch, 1))           # LayerNorm bias
        params[pfx + "w2"] = nrm(ks[o + 4], (ch, ch))          # Conv2d(ch, ch, 1)
        params[pfx + "b2"] = nrm(ks[o + 5], (ch, 1))
    return params


def decoder_forward(low, high, params, *, force_tiled=False, tile_rows=None):
    """low: (B, C, H, W); high: (B, C, H//2, W//2). Returns (B, C, H, W)."""
    B, C, H, W = low.shape
    assert high.shape == (B, C, H // 2, W // 2), "high must be at half resolution"
    # TODO(synk): relax to any even H (padded / online path); H % 16 == 0 keeps
    # every in-kernel reshape layout-free (f32 sublane tile = 8 rows).
    assert H % 16 == 0 and W % 2 == 0, "decoder_forward requires H % 16 == 0, W % 2 == 0"

    io_dtype = low.dtype
    itemsize = jnp.dtype(io_dtype).itemsize
    bf16_io = io_dtype == jnp.bfloat16
    work_isz = 2 if bf16_io else 4
    f32 = jnp.float32

    # Row-group packing factor k: the k full-res rows of group g sit side by side
    # on lanes, so the trailing block dim is k*W.  Grow k (while H allows) until
    # the elementwise / store path is lane-dense (>= 128 lanes).
    k = 2
    while k * W < 128 and H % (16 * k) == 0:
        k *= 2
    G, KW = H // k, k * W

    # ----- constants, built once outside the kernel (hoisted selector) -------
    sel = _build_selector(k, W).astype(io_dtype if bf16_io else f32)   # (KW/4, KW)
    wm_col = params["wm"].reshape(C, 1).astype(f32)
    colvec = jnp.concatenate([wm_col, params["mb2"], params["ab2"]], axis=1
                             ).astype(f32)                              # (C, 3)
    rowvec = jnp.stack(
        [params["mb1"][:, 0], params["ab1"][:, 0],
         params["mlw"][:, 0], params["alw"][:, 0],
         params["mlb"][:, 0], params["alb"][:, 0]], axis=0).astype(f32)  # (6, C)
    wpack = jnp.stack(
        [params["mw1"].T, params["aw1"].T, params["mw2"], params["aw2"]],
        axis=0).astype(f32)                                              # (4, C, C)

    # Free, layout-preserving HBM views -- nothing extra materialized.
    low_v = low.reshape(B, C, G, KW)
    high_flat = high.reshape(B, C * G, KW // 4)      # monolithic path (2-D/batch)
    high_v = high.reshape(B, C, G, KW // 4)          # tiled path (tiled along G)

    # ----- VMEM budget & path selection ---------------------------------------
    cap = _vmem_capacity_bytes()
    const_bytes = (sel.size * sel.dtype.itemsize
                   + (colvec.size + rowvec.size + wpack.size) * 4)
    sp = C * H * W                                   # low/out elements per batch
    # double-buffered low+out+high blocks + ~4 spatial-sized live temporaries
    mono_need = (2 * (2 * sp + sp // 4) * itemsize + 4 * sp * work_isz
                 + 2 * const_bytes + (2 << 20))
    use_tiled = force_tiled or mono_need > int(0.7 * cap)

    if not use_tiled:
        cost = pl.CostEstimate(
            flops=int(2 * B * (C * G) * (KW // 4) * KW + 12 * B * sp + 8 * B * C * C),
            transcendentals=int(B * G * KW + 4 * B * C),
            bytes_accessed=int(itemsize * B * (2 * sp + sp // 4) + const_bytes))

        def build_mono(single_buf):
            cs = lambda a: _const_spec(a.shape, single_buf)
            return pl.pallas_call(
                _decoder_kernel,
                out_shape=jax.ShapeDtypeStruct((B, C, G, KW), io_dtype),
                grid=(B,),
                in_specs=[
                    pl.BlockSpec((1, C, G, KW), lambda b: (b, 0, 0, 0)),       # low
                    pl.BlockSpec((1, C * G, KW // 4), lambda b: (b, 0, 0)),    # high
                    cs(sel), cs(rowvec), cs(colvec), cs(wpack),
                ],
                out_specs=pl.BlockSpec((1, C, G, KW), lambda b: (b, 0, 0, 0)),
                compiler_params=pltpu.CompilerParams(
                    dimension_semantics=("parallel",),
                    vmem_limit_bytes=_vmem_limit(mono_need, cap)),
                cost_estimate=cost,
            )(low_v, high_flat, sel, rowvec, colvec, wpack)

        out = _run_with_fallback(build_mono)
        return out.reshape(B, C, H, W)

    # ----- spatially tiled two-pass (online softmax) path ----------------------
    tg_align = 8 * max(1, 4 // itemsize)             # 8 rows f32, 16 rows bf16
    if tile_rows is not None:
        Tg = int(tile_rows)
    elif G % tg_align != 0:
        # TODO(synk): sub-32-bit dtypes with G not sublane-tile aligned fall back
        # to a single spatial tile (Mosaic relayout on the in-kernel reshape).
        Tg = G
    else:
        row_bytes = (2 * (2 * C * KW + C * KW // 4) * itemsize
                     + 4 * C * KW * work_isz)
        Tg = (int(0.25 * cap) // max(row_bytes, 1)) // tg_align * tg_align
        Tg = max(tg_align, min(Tg, G))
        while Tg > tg_align and G % Tg != 0:
            Tg -= tg_align
    assert Tg >= 1 and G % Tg == 0, "spatial tile must divide H // k"
    n_t = G // Tg
    tile_sp = C * Tg * KW
    tile_need = (2 * (2 * tile_sp + tile_sp // 4) * itemsize
                 + 4 * tile_sp * work_isz + 2 * const_bytes + (2 << 20))
    vlim = _vmem_limit(tile_need, cap)

    def build_tiled(single_buf):
        cs = lambda a: _const_spec(a.shape, single_buf)
        lo_spec = pl.BlockSpec((1, C, Tg, KW), lambda b, t: (b, 0, t, 0))
        hi_spec = pl.BlockSpec((1, C, Tg, KW // 4), lambda b, t: (b, 0, t, 0))
        mad_spec = pl.BlockSpec((1, C, 2), lambda b, t: (b, 0, 0))

        # pass 1: online-softmax spatial pool + channel MLP -> (B, C, 2)
        mad = pl.pallas_call(
            _ctx_mlp_kernel,
            out_shape=jax.ShapeDtypeStruct((B, C, 2), f32),
            grid_spec=pltpu.PrefetchScalarGridSpec(
                num_scalar_prefetch=0,
                grid=(B, n_t),
                in_specs=[lo_spec, hi_spec, cs(sel), cs(rowvec), cs(colvec),
                          cs(wpack)],
                out_specs=mad_spec,
                scratch_shapes=[pltpu.VMEM((1, 1), f32),     # running max
                                pltpu.VMEM((1, 1), f32),     # running exp-sum
                                pltpu.VMEM((C, 1), f32)]),   # ctx numerator
            compiler_params=pltpu.CompilerParams(
                dimension_semantics=("parallel", "arbitrary"),
                vmem_limit_bytes=vlim),
        )(low_v, high_v, sel, rowvec, colvec, wpack)

        # pass 2: fully data-parallel epilogue (both axes "parallel").
        return pl.pallas_call(
            _apply_kernel,
            out_shape=jax.ShapeDtypeStruct((B, C, G, KW), io_dtype),
            grid=(B, n_t),
            in_specs=[lo_spec, hi_spec, cs(sel), mad_spec],
            out_specs=lo_spec,
            compiler_params=pltpu.CompilerParams(
                dimension_semantics=("parallel", "parallel"),
                vmem_limit_bytes=vlim),
        )(low_v, high_v, sel, mad)

    out = _run_with_fallback(build_tiled)
    return out.reshape(B, C, H, W)


def decoder_reference(low, high, params):
    """Pure-JAX reference of the PyTorch forward for correctness checking."""
    B, C, H, W = low.shape
    high_up = jnp.repeat(jnp.repeat(high, 2, axis=2), 2, axis=3)
    fusion = (low * high_up).astype(jnp.float32)
    f2 = fusion.reshape(B, C, H * W)

    logits = jnp.einsum("c,bcs->bs", params["wm"][0], f2) + params["bm"][0, 0]
    p = jax.nn.softmax(logits, axis=-1)
    ctx = jnp.einsum("bcs,bs->bc", f2, p)

    def branch(pfx):
        h = ctx @ params[pfx + "w1"].T + params[pfx + "b1"][:, 0]
        mu = h.mean(-1, keepdims=True)
        var = ((h - mu) ** 2).mean(-1, keepdims=True)
        hn = (h - mu) / jnp.sqrt(var + LN_EPS) * params[pfx + "lw"][:, 0] \
            + params[pfx + "lb"][:, 0]
        hr = jnp.maximum(hn, 0.0)
        return hr @ params[pfx + "w2"].T + params[pfx + "b2"][:, 0]

    mul_t = jax.nn.sigmoid(branch("m"))
    add_t = branch("a")
    return fusion * mul_t[:, :, None, None] + add_t[:, :, None, None]


if __name__ == "__main__":
    # Accurate matmuls in the pure-JAX reference as well (tight comparison).
    jax.config.update("jax_default_matmul_precision", "highest")

    key = jax.random.PRNGKey(0)
    k1, k2, k3, k4, k5, k6, k7 = jax.random.split(key, 7)

    # ---- case 1: default fused single-block path (k = 2) --------------------
    B, C, H, W = 2, 4, 16, 16
    low = jax.random.normal(k1, (B, C, H, W), dtype=jnp.float32)
    high = jax.random.normal(k2, (B, C, H // 2, W // 2), dtype=jnp.float32)
    params = make_params(C, k3)

    out = jax.block_until_ready(decoder_forward(low, high, params))
    ref = jax.block_until_ready(decoder_reference(low, high, params))
    assert out.shape == (B, C, H, W)
    err1 = float(jnp.max(jnp.abs(out - ref)))
    assert jnp.allclose(out, ref, atol=2e-4, rtol=2e-4), \
        f"monolithic path max abs err {err1}"

    # ---- case 2: forced spatially tiled online-softmax path (2 tiles) -------
    B2, H2_, W2_ = 1, 32, 64
    low2 = jax.random.normal(k4, (B2, C, H2_, W2_), dtype=jnp.float32)
    high2 = jax.random.normal(k5, (B2, C, H2_ // 2, W2_ // 2), dtype=jnp.float32)
    out2 = jax.block_until_ready(
        decoder_forward(low2, high2, params, force_tiled=True, tile_rows=8))
    ref2 = jax.block_until_ready(decoder_reference(low2, high2, params))
    err2 = float(jnp.max(jnp.abs(out2 - ref2)))
    assert jnp.allclose(out2, ref2, atol=2e-4, rtol=2e-4), \
        f"tiled online-softmax path max abs err {err2}"

    # ---- case 3: lane-dense row-group packing (k = 8, small W) --------------
    B3, H3_, W3_ = 1, 64, 16
    low3 = jax.random.normal(k6, (B3, C, H3_, W3_), dtype=jnp.float32)
    high3 = jax.random.normal(k7, (B3, C, H3_ // 2, W3_ // 2), dtype=jnp.float32)
    out3 = jax.block_until_ready(decoder_forward(low3, high3, params))
    ref3 = jax.block_until_ready(decoder_reference(low3, high3, params))
    err3 = float(jnp.max(jnp.abs(out3 - ref3)))
    assert jnp.allclose(out3, ref3, atol=2e-4, rtol=2e-4), \
        f"lane-dense packed path max abs err {err3}"

    print("KERNEL_OK")
</pallas_src>

<mosaic_0001>
module attributes {stable_mosaic.version = 11 : i64} {
  func.func @_decoder_kernel(%arg0: i32, %arg1: memref<1x4x8x32xf32, #tpu.memory_space<vmem>>, %arg2: memref<1x32x8xf32, #tpu.memory_space<vmem>>, %arg3: memref<8x32xf32, #tpu.memory_space<vmem>>, %arg4: memref<6x4xf32, #tpu.memory_space<vmem>>, %arg5: memref<4x3xf32, #tpu.memory_space<vmem>>, %arg6: memref<4x4x4xf32, #tpu.memory_space<vmem>>, %arg7: memref<1x4x8x32xf32, #tpu.memory_space<vmem>>) attributes {dimension_semantics = [#tpu.dimension_semantics<parallel>], iteration_bounds = array<i64: 2>, scalar_prefetch = 0 : i64, scratch_operands = 0 : i64, tpu.core_type = #tpu.core_type<tc>, window_params = [{transform_indices = @transform_0, window_bounds = array<i64: 1, 4, 8, 32>}, {transform_indices = @transform_1, window_bounds = array<i64: 1, 32, 8>}, {pipeline_mode = #tpu.pipeline_mode<synchronous>, transform_indices = @transform_2, window_bounds = array<i64: 8, 32>}, {pipeline_mode = #tpu.pipeline_mode<synchronous>, transform_indices = @transform_3, window_bounds = array<i64: 6, 4>}, {pipeline_mode = #tpu.pipeline_mode<synchronous>, transform_indices = @transform_4, window_bounds = array<i64: 4, 3>}, {pipeline_mode = #tpu.pipeline_mode<synchronous>, transform_indices = @transform_5, window_bounds = array<i64: 4, 4, 4>}, {transform_indices = @transform_6, window_bounds = array<i64: 1, 4, 8, 32>}]} {
    %c0 = arith.constant 0 : index
    %c0_0 = arith.constant 0 : index
    %c0_1 = arith.constant 0 : index
    %c0_2 = arith.constant 0 : index
    %0 = vector.load %arg1[%c0, %c0_0, %c0_1, %c0_2] : memref<1x4x8x32xf32, #tpu.memory_space<vmem>>, vector<1x4x8x32xf32>
    %1 = vector.shape_cast %0 : vector<1x4x8x32xf32> to vector<4x8x32xf32>
    %c0_3 = arith.constant 0 : index
    %c0_4 = arith.constant 0 : index
    %c0_5 = arith.constant 0 : index
    %2 = vector.load %arg2[%c0_3, %c0_4, %c0_5] : memref<1x32x8xf32, #tpu.memory_space<vmem>>, vector<1x32x8xf32>
    %3 = vector.shape_cast %2 : vector<1x32x8xf32> to vector<32x8xf32>
    %c0_6 = arith.constant 0 : index
    %c0_7 = arith.constant 0 : index
    %4 = vector.load %arg3[%c0_6, %c0_7] : memref<8x32xf32, #tpu.memory_space<vmem>>, vector<8x32xf32>
    %cst = arith.constant dense<0.000000e+00> : vector<32x32xf32>
    %5 = tpu.matmul %3, %4, %cst {dimension_numbers = #tpu.dot_dimension_numbers<[1], [0], [0], [1], [0, 0, 1, 1], [], []>, precision = #tpu.contract_precision<fp32>} : vector<32x8xf32>, vector<8x32xf32>, vector<32x32xf32> -> vector<32x32xf32>
    %6 = vector.shape_cast %5 : vector<32x32xf32> to vector<4x8x32xf32>
    %7 = arith.mulf %1, %6 : vector<4x8x32xf32>
    %c0_8 = arith.constant 0 : index
    %c0_9 = arith.constant 0 : index
    %8 = vector.load %arg5[%c0_8, %c0_9] : memref<4x3xf32, #tpu.memory_space<vmem>>, vector<4x3xf32>
    %9 = vector.extract_strided_slice %8 {offsets = [0, 0], sizes = [4, 1], strides = [1, 1]} : vector<4x3xf32> to vector<4x1xf32>
    %10 = vector.shape_cast %9 : vector<4x1xf32> to vector<4x1x1xf32>
    %11 = vector.broadcast %10 : vector<4x1x1xf32> to vector<4x8x32xf32>
    %12 = arith.mulf %7, %11 : vector<4x8x32xf32>
    %cst_10 = arith.constant dense<0.000000e+00> : vector<8x32xf32>
    %13 = vector.multi_reduction <add>, %12, %cst_10 [0] : vector<4x8x32xf32> to vector<8x32xf32>
    %cst_11 = arith.constant dense<0xFF800000> : vector<8xf32>
    %14 = vector.multi_reduction <maximumf>, %13, %cst_11 [1] : vector<8x32xf32> to vector<8xf32>
    %15 = vector.shape_cast %14 : vector<8xf32> to vector<8x1xf32>
    %cst_12 = arith.constant dense<0xFF800000> : vector<1xf32>
    %16 = vector.multi_reduction <maximumf>, %15, %cst_12 [0] : vector<8x1xf32> to vector<1xf32>
    %17 = vector.shape_cast %16 : vector<1xf32> to vector<1x1xf32>
    %18 = vector.broadcast %17 : vector<1x1xf32> to vector<8x32xf32>
    %19 = arith.subf %13, %18 : vector<8x32xf32>
    %20 = math.exp %19 : vector<8x32xf32>
    %cst_13 = arith.constant dense<0.000000e+00> : vector<8xf32>
    %21 = vector.multi_reduction <add>, %20, %cst_13 [1] : vector<8x32xf32> to vector<8xf32>
    %22 = vector.shape_cast %21 : vector<8xf32> to vector<8x1xf32>
    %cst_14 = arith.constant dense<0.000000e+00> : vector<1xf32>
    %23 = vector.multi_reduction <add>, %22, %cst_14 [0] : vector<8x1xf32> to vector<1xf32>
    %24 = vector.shape_cast %23 : vector<1xf32> to vector<1x1xf32>
    %25 = vector.shape_cast %20 : vector<8x32xf32> to vector<1x8x32xf32>
    %26 = vector.broadcast %25 : vector<1x8x32xf32> to vector<4x8x32xf32>
    %27 = arith.mulf %7, %26 : vector<4x8x32xf32>
    %cst_15 = arith.constant dense<0.000000e+00> : vector<4x8xf32>
    %28 = vector.multi_reduction <add>, %27, %cst_15 [2] : vector<4x8x32xf32> to vector<4x8xf32>
    %29 = vector.shape_cast %28 : vector<4x8xf32> to vector<4x8x1xf32>
    %cst_16 = arith.constant dense<0.000000e+00> : vector<4x1xf32>
    %30 = vector.multi_reduction <add>, %29, %cst_16 [1] : vector<4x8x1xf32> to vector<4x1xf32>
    %cst_17 = arith.constant 1.000000e+00 : f32
    %31 = vector.broadcast %cst_17 : f32 to vector<1x1xf32>
    %32 = arith.divf %31, %24 : vector<1x1xf32>
    %33 = vector.broadcast %32 : vector<1x1xf32> to vector<4x1xf32>
    %34 = arith.mulf %30, %33 : vector<4x1xf32>
    %c0_18 = arith.constant 0 : index
    %c0_19 = arith.constant 0 : index
    %35 = vector.load %arg4[%c0_18, %c0_19] : memref<6x4xf32, #tpu.memory_space<vmem>>, vector<6x4xf32>
    %c0_20 = arith.constant 0 : index
    %c0_21 = arith.constant 0 : index
    %c0_22 = arith.constant 0 : index
    %36 = vector.load %arg6[%c0_20, %c0_21, %c0_22] : memref<4x4x4xf32, #tpu.memory_space<vmem>>, vector<1x4x4xf32>
    %37 = vector.shape_cast %36 : vector<1x4x4xf32> to vector<4x4xf32>
    %38 = vector.broadcast %34 : vector<4x1xf32> to vector<4x4xf32>
    %39 = arith.mulf %37, %38 : vector<4x4xf32>
    %cst_23 = arith.constant dense<0.000000e+00> : vector<4xf32>
    %40 = vector.multi_reduction <add>, %39, %cst_23 [0] : vector<4x4xf32> to vector<4xf32>
    %41 = vector.shape_cast %40 : vector<4xf32> to vector<1x4xf32>
    %42 = vector.extract_strided_slice %35 {offsets = [0, 0], sizes = [1, 4], strides = [1, 1]} : vector<6x4xf32> to vector<1x4xf32>
    %43 = arith.addf %41, %42 : vector<1x4xf32>
    %c1 = arith.constant 1 : index
    %c0_24 = arith.constant 0 : index
    %c0_25 = arith.constant 0 : index
    %44 = vector.load %arg6[%c1, %c0_24, %c0_25] : memref<4x4x4xf32, #tpu.memory_space<vmem>>, vector<1x4x4xf32>
    %45 = vector.shape_cast %44 : vector<1x4x4xf32> to vector<4x4xf32>
    %46 = vector.broadcast %34 : vector<4x1xf32> to vector<4x4xf32>
    %47 = arith.mulf %45, %46 : vector<4x4xf32>
    %cst_26 = arith.constant dense<0.000000e+00> : vector<4xf32>
    %48 = vector.multi_reduction <add>, %47, %cst_26 [0] : vector<4x4xf32> to vector<4xf32>
    %49 = vector.shape_cast %48 : vector<4xf32> to vector<1x4xf32>
    %50 = vector.extract_strided_slice %35 {offsets = [1, 0], sizes = [1, 4], strides = [1, 1]} : vector<6x4xf32> to vector<1x4xf32>
    %51 = arith.addf %49, %50 : vector<1x4xf32>
    %52 = tpu.concatenate %43, %51 in 0 : vector<1x4xf32>, vector<1x4xf32> -> vector<2x4xf32>
    %cst_27 = arith.constant dense<0.000000e+00> : vector<2xf32>
    %53 = vector.multi_reduction <add>, %52, %cst_27 [1] : vector<2x4xf32> to vector<2xf32>
    %54 = vector.shape_cast %53 : vector<2xf32> to vector<2x1xf32>
    %cst_28 = arith.constant 4.000000e+00 : f32
    %55 = vector.broadcast %cst_28 : f32 to vector<2x1xf32>
    %56 = arith.divf %54, %55 : vector<2x1xf32>
    %57 = vector.broadcast %56 : vector<2x1xf32> to vector<2x4xf32>
    %58 = arith.subf %52, %57 : vector<2x4xf32>
    %59 = arith.mulf %58, %58 : vector<2x4xf32>
    %cst_29 = arith.constant dense<0.000000e+00> : vector<2xf32>
    %60 = vector.multi_reduction <add>, %59, %cst_29 [1] : vector<2x4xf32> to vector<2xf32>
    %61 = vector.shape_cast %60 : vector<2xf32> to vector<2x1xf32>
    %cst_30 = arith.constant 4.000000e+00 : f32
    %62 = vector.broadcast %cst_30 : f32 to vector<2x1xf32>
    %63 = arith.divf %61, %62 : vector<2x1xf32>
    %64 = vector.broadcast %56 : vector<2x1xf32> to vector<2x4xf32>
    %65 = arith.subf %52, %64 : vector<2x4xf32>
    %cst_31 = arith.constant 9.99999974E-6 : f32
    %66 = vector.broadcast %cst_31 : f32 to vector<2x1xf32>
    %67 = arith.addf %63, %66 : vector<2x1xf32>
    %68 = math.rsqrt %67 : vector<2x1xf32>
    %69 = vector.broadcast %68 : vector<2x1xf32> to vector<2x4xf32>
    %70 = arith.mulf %65, %69 : vector<2x4xf32>
    %71 = vector.extract_strided_slice %35 {offsets = [2, 0], sizes = [2, 4], strides = [1, 1]} : vector<6x4xf32> to vector<2x4xf32>
    %72 = arith.mulf %70, %71 : vector<2x4xf32>
    %73 = vector.extract_strided_slice %35 {offsets = [4, 0], sizes = [2, 4], strides = [1, 1]} : vector<6x4xf32> to vector<2x4xf32>
    %74 = arith.addf %72, %73 : vector<2x4xf32>
    %cst_32 = arith.constant 0.000000e+00 : f32
    %75 = vector.broadcast %cst_32 : f32 to vector<2x4xf32>
    %76 = arith.maximumf %74, %75 : vector<2x4xf32>
    %c2 = arith.constant 2 : index
    %c0_33 = arith.constant 0 : index
    %c0_34 = arith.constant 0 : index
    %77 = vector.load %arg6[%c2, %c0_33, %c0_34] : memref<4x4x4xf32, #tpu.memory_space<vmem>>, vector<1x4x4xf32>
    %78 = vector.shape_cast %77 : vector<1x4x4xf32> to vector<4x4xf32>
    %79 = vector.extract_strided_slice %76 {offsets = [0, 0], sizes = [1, 4], strides = [1, 1]} : vector<2x4xf32> to vector<1x4xf32>
    %80 = vector.broadcast %79 : vector<1x4xf32> to vector<4x4xf32>
    %81 = arith.mulf %78, %80 : vector<4x4xf32>
    %cst_35 = arith.constant dense<0.000000e+00> : vector<4xf32>
    %82 = vector.multi_reduction <add>, %81, %cst_35 [1] : vector<4x4xf32> to vector<4xf32>
    %83 = vector.shape_cast %82 : vector<4xf32> to vector<4x1xf32>
    %84 = vector.extract_strided_slice %8 {offsets = [0, 1], sizes = [4, 1], strides = [1, 1]} : vector<4x3xf32> to vector<4x1xf32>
    %85 = arith.addf %83, %84 : vector<4x1xf32>
    %86 = arith.negf %85 : vector<4x1xf32>
    %87 = math.exp %86 : vector<4x1xf32>
    %cst_36 = arith.constant 1.000000e+00 : f32
    %88 = vector.broadcast %cst_36 : f32 to vector<4x1xf32>
    %89 = arith.addf %88, %87 : vector<4x1xf32>
    %90 = arith.divf %88, %89 : vector<4x1xf32>
    %c3 = arith.constant 3 : index
    %c0_37 = arith.constant 0 : index
    %c0_38 = arith.constant 0 : index
    %91 = vector.load %arg6[%c3, %c0_37, %c0_38] : memref<4x4x4xf32, #tpu.memory_space<vmem>>, vector<1x4x4xf32>
    %92 = vector.shape_cast %91 : vector<1x4x4xf32> to vector<4x4xf32>
    %93 = vector.extract_strided_slice %76 {offsets = [1, 0], sizes = [1, 4], strides = [1, 1]} : vector<2x4xf32> to vector<1x4xf32>
    %94 = vector.broadcast %93 : vector<1x4xf32> to vector<4x4xf32>
    %95 = arith.mulf %92, %94 : vector<4x4xf32>
    %cst_39 = arith.constant dense<0.000000e+00> : vector<4xf32>
    %96 = vector.multi_reduction <add>, %95, %cst_39 [1] : vector<4x4xf32> to vector<4xf32>
    %97 = vector.shape_cast %96 : vector<4xf32> to vector<4x1xf32>
    %98 = vector.extract_strided_slice %8 {offsets = [0, 2], sizes = [4, 1], strides = [1, 1]} : vector<4x3xf32> to vector<4x1xf32>
    %99 = arith.addf %97, %98 : vector<4x1xf32>
    %100 = vector.shape_cast %90 : vector<4x1xf32> to vector<4x1x1xf32>
    %101 = vector.broadcast %100 : vector<4x1x1xf32> to vector<4x8x32xf32>
    %102 = arith.mulf %7, %101 : vector<4x8x32xf32>
    %103 = vector.shape_cast %99 : vector<4x1xf32> to vector<4x1x1xf32>
    %104 = vector.broadcast %103 : vector<4x1x1xf32> to vector<4x8x32xf32>
    %105 = arith.addf %102, %104 : vector<4x8x32xf32>
    %c0_40 = arith.constant 0 : index
    %c0_41 = arith.constant 0 : index
    %c0_42 = arith.constant 0 : index
    %c0_43 = arith.constant 0 : index
    %106 = vector.load %arg7[%c0_40, %c0_41, %c0_42, %c0_43] : memref<1x4x8x32xf32, #tpu.memory_space<vmem>>, vector<1x4x8x32xf32>
    %107 = vector.shape_cast %106 : vector<1x4x8x32xf32> to vector<4x8x32xf32>
    %108 = vector.shape_cast %105 : vector<4x8x32xf32> to vector<1x4x8x32xf32>
    tpu.vector_store %arg7[%c0_40, %c0_41, %c0_42, %c0_43], %108 {strides = array<i32>} : memref<1x4x8x32xf32, #tpu.memory_space<vmem>>, vector<1x4x8x32xf32>,
    return
  }
  func.func @transform_0(%arg0: i32) -> (i32, i32, i32, i32) {
    %c0_i32 = arith.constant 0 : i32
    %c0_i32_0 = arith.constant 0 : i32
    %c0_i32_1 = arith.constant 0 : i32
    %c0_i32_2 = arith.constant 0 : i32
    return %arg0, %c0_i32, %c0_i32_0, %c0_i32_1 : i32, i32, i32, i32
  }
  func.func @transform_1(%arg0: i32) -> (i32, i32, i32) {
    %c0_i32 = arith.constant 0 : i32
    %c0_i32_0 = arith.constant 0 : i32
    %c0_i32_1 = arith.constant 0 : i32
    return %arg0, %c0_i32, %c0_i32_0 : i32, i32, i32
  }
  func.func @transform_2(%arg0: i32) -> (i32, i32) {
    %c0_i32 = arith.constant 0 : i32
    %c0_i32_0 = arith.constant 0 : i32
    %c0_i32_1 = arith.constant 0 : i32
    return %c0_i32, %c0_i32_0 : i32, i32
  }
  func.func @transform_3(%arg0: i32) -> (i32, i32) {
    %c0_i32 = arith.constant 0 : i32
    %c0_i32_0 = arith.constant 0 : i32
    %c0_i32_1 = arith.constant 0 : i32
    return %c0_i32, %c0_i32_0 : i32, i32
  }
  func.func @transform_4(%arg0: i32) -> (i32, i32) {
    %c0_i32 = arith.constant 0 : i32
    %c0_i32_0 = arith.constant 0 : i32
    %c0_i32_1 = arith.constant 0 : i32
    return %c0_i32, %c0_i32_0 : i32, i32
  }
  func.func @transform_5(%arg0: i32) -> (i32, i32, i32) {
    %c0_i32 = arith.constant 0 : i32
    %c0_i32_0 = arith.constant 0 : i32
    %c0_i32_1 = arith.constant 0 : i32
    %c0_i32_2 = arith.constant 0 : i32
    return %c0_i32, %c0_i32_0, %c0_i32_1 : i32, i32, i32
  }
  func.func @transform_6(%arg0: i32) -> (i32, i32, i32, i32) {
    %c0_i32 = arith.constant 0 : i32
    %c0_i32_0 = arith.constant 0 : i32
    %c0_i32_1 = arith.constant 0 : i32
    %c0_i32_2 = arith.constant 0 : i32
    return %arg0, %c0_i32, %c0_i32_0, %c0_i32_1 : i32, i32, i32, i32
  }
}

module attributes {stable_mosaic.version = 11 : i64} {
  func.func @_decoder_kernel(%arg0: i32, %arg1: memref<1x4x8x32xf32, #tpu.memory_space<vmem>>, %arg2: memref<1x32x8xf32, #tpu.memory_space<vmem>>, %arg3: memref<8x32xf32, #tpu.memory_space<vmem>>, %arg4: memref<6x4xf32, #tpu.memory_space<vmem>>, %arg5: memref<4x3xf32, #tpu.memory_space<vmem>>, %arg6: memref<4x4x4xf32, #tpu.memory_space<vmem>>, %arg7: memref<1x4x8x32xf32, #tpu.memory_space<vmem>>) attributes {dimension_semantics = [#tpu.dimension_semantics<parallel>], iteration_bounds = array<i64: 2>, scalar_prefetch = 0 : i64, scratch_operands = 0 : i64, tpu.core_type = #tpu.core_type<tc>, window_params = [{transform_indices = @transform_0, window_bounds = array<i64: 1, 4, 8, 32>}, {transform_indices = @transform_1, window_bounds = array<i64: 1, 32, 8>}, {pipeline_mode = #tpu.pipeline_mode<synchronous>, transform_indices = @transform_2, window_bounds = array<i64: 8, 32>}, {pipeline_mode = #tpu.pipeline_mode<synchronous>, transform_indices = @transform_3, window_bounds = array<i64: 6, 4>}, {pipeline_mode = #tpu.pipeline_mode<synchronous>, transform_indices = @transform_4, window_bounds = array<i64: 4, 3>}, {pipeline_mode = #tpu.pipeline_mode<synchronous>, transform_indices = @transform_5, window_bounds = array<i64: 4, 4, 4>}, {transform_indices = @transform_6, window_bounds = array<i64: 1, 4, 8, 32>}]} {
    %c0 = arith.constant 0 : index
    %c0_0 = arith.constant 0 : index
    %c0_1 = arith.constant 0 : index
    %c0_2 = arith.constant 0 : index
    %0 = vector.load %arg1[%c0, %c0_0, %c0_1, %c0_2] : memref<1x4x8x32xf32, #tpu.memory_space<vmem>>, vector<1x4x8x32xf32>
    %1 = vector.shape_cast %0 : vector<1x4x8x32xf32> to vector<4x8x32xf32>
    %c0_3 = arith.constant 0 : index
    %c0_4 = arith.constant 0 : index
    %c0_5 = arith.constant 0 : index
    %2 = vector.load %arg2[%c0_3, %c0_4, %c0_5] : memref<1x32x8xf32, #tpu.memory_space<vmem>>, vector<1x32x8xf32>
    %3 = vector.shape_cast %2 : vector<1x32x8xf32> to vector<32x8xf32>
    %c0_6 = arith.constant 0 : index
    %c0_7 = arith.constant 0 : index
    %4 = vector.load %arg3[%c0_6, %c0_7] : memref<8x32xf32, #tpu.memory_space<vmem>>, vector<8x32xf32>
    %cst = arith.constant dense<0.000000e+00> : vector<32x32xf32>
    %5 = tpu.matmul %3, %4, %cst {dimension_numbers = #tpu.dot_dimension_numbers<[1], [0], [0], [1], [0, 0, 1, 1], [], []>, precision = #tpu.contract_precision<fp32>} : vector<32x8xf32>, vector<8x32xf32>, vector<32x32xf32> -> vector<32x32xf32>
    %6 = vector.shape_cast %5 : vector<32x32xf32> to vector<4x8x32xf32>
    %7 = arith.mulf %1, %6 : vector<4x8x32xf32>
    %c0_8 = arith.constant 0 : index
    %c0_9 = arith.constant 0 : index
    %8 = vector.load %arg5[%c0_8, %c0_9] : memref<4x3xf32, #tpu.memory_space<vmem>>, vector<4x3xf32>
    %9 = vector.extract_strided_slice %8 {offsets = [0, 0], sizes = [4, 1], strides = [1, 1]} : vector<4x3xf32> to vector<4x1xf32>
    %10 = vector.shape_cast %9 : vector<4x1xf32> to vector<4x1x1xf32>
    %11 = vector.broadcast %10 : vector<4x1x1xf32> to vector<4x8x32xf32>
    %12 = arith.mulf %7, %11 : vector<4x8x32xf32>
    %cst_10 = arith.constant dense<0.000000e+00> : vector<8x32xf32>
    %13 = vector.multi_reduction <add>, %12, %cst_10 [0] : vector<4x8x32xf32> to vector<8x32xf32>
    %cst_11 = arith.constant dense<0xFF800000> : vector<8xf32>
    %14 = vector.multi_reduction <maximumf>, %13, %cst_11 [1] : vector<8x32xf32> to vector<8xf32>
    %15 = vector.shape_cast %14 : vector<8xf32> to vector<8x1xf32>
    %cst_12 = arith.constant dense<0xFF800000> : vector<1xf32>
    %16 = vector.multi_reduction <maximumf>, %15, %cst_12 [0] : vector<8x1xf32> to vector<1xf32>
    %17 = vector.shape_cast %16 : vector<1xf32> to vector<1x1xf32>
    %18 = vector.broadcast %17 : vector<1x1xf32> to vector<8x32xf32>
    %19 = arith.subf %13, %18 : vector<8x32xf32>
    %20 = math.exp %19 : vector<8x32xf32>
    %cst_13 = arith.constant dense<0.000000e+00> : vector<8xf32>
    %21 = vector.multi_reduction <add>, %20, %cst_13 [1] : vector<8x32xf32> to vector<8xf32>
    %22 = vector.shape_cast %21 : vector<8xf32> to vector<8x1xf32>
    %cst_14 = arith.constant dense<0.000000e+00> : vector<1xf32>
    %23 = vector.multi_reduction <add>, %22, %cst_14 [0] : vector<8x1xf32> to vector<1xf32>
    %24 = vector.shape_cast %23 : vector<1xf32> to vector<1x1xf32>
    %25 = vector.shape_cast %20 : vector<8x32xf32> to vector<1x8x32xf32>
    %26 = vector.broadcast %25 : vector<1x8x32xf32> to vector<4x8x32xf32>
    %27 = arith.mulf %7, %26 : vector<4x8x32xf32>
    %cst_15 = arith.constant dense<0.000000e+00> : vector<4x8xf32>
    %28 = vector.multi_reduction <add>, %27, %cst_15 [2] : vector<4x8x32xf32> to vector<4x8xf32>
    %29 = vector.shape_cast %28 : vector<4x8xf32> to vector<4x8x1xf32>
    %cst_16 = arith.constant dense<0.000000e+00> : vector<4x1xf32>
    %30 = vector.multi_reduction <add>, %29, %cst_16 [1] : vector<4x8x1xf32> to vector<4x1xf32>
    %cst_17 = arith.constant 1.000000e+00 : f32
    %31 = vector.broadcast %cst_17 : f32 to vector<1x1xf32>
    %32 = arith.divf %31, %24 : vector<1x1xf32>
    %33 = vector.broadcast %32 : vector<1x1xf32> to vector<4x1xf32>
    %34 = arith.mulf %30, %33 : vector<4x1xf32>
    %c0_18 = arith.constant 0 : index
    %c0_19 = arith.constant 0 : index
    %35 = vector.load %arg4[%c0_18, %c0_19] : memref<6x4xf32, #tpu.memory_space<vmem>>, vector<6x4xf32>
    %c0_20 = arith.constant 0 : index
    %c0_21 = arith.constant 0 : index
    %c0_22 = arith.constant 0 : index
    %36 = vector.load %arg6[%c0_20, %c0_21, %c0_22] : memref<4x4x4xf32, #tpu.memory_space<vmem>>, vector<1x4x4xf32>
    %37 = vector.shape_cast %36 : vector<1x4x4xf32> to vector<4x4xf32>
    %38 = vector.broadcast %34 : vector<4x1xf32> to vector<4x4xf32>
    %39 = arith.mulf %37, %38 : vector<4x4xf32>
    %cst_23 = arith.constant dense<0.000000e+00> : vector<4xf32>
    %40 = vector.multi_reduction <add>, %39, %cst_23 [0] : vector<4x4xf32> to vector<4xf32>
    %41 = vector.shape_cast %40 : vector<4xf32> to vector<1x4xf32>
    %42 = vector.extract_strided_slice %35 {offsets = [0, 0], sizes = [1, 4], strides = [1, 1]} : vector<6x4xf32> to vector<1x4xf32>
    %43 = arith.addf %41, %42 : vector<1x4xf32>
    %c1 = arith.constant 1 : index
    %c0_24 = arith.constant 0 : index
    %c0_25 = arith.constant 0 : index
    %44 = vector.load %arg6[%c1, %c0_24, %c0_25] : memref<4x4x4xf32, #tpu.memory_space<vmem>>, vector<1x4x4xf32>
    %45 = vector.shape_cast %44 : vector<1x4x4xf32> to vector<4x4xf32>
    %46 = vector.broadcast %34 : vector<4x1xf32> to vector<4x4xf32>
    %47 = arith.mulf %45, %46 : vector<4x4xf32>
    %cst_26 = arith.constant dense<0.000000e+00> : vector<4xf32>
    %48 = vector.multi_reduction <add>, %47, %cst_26 [0] : vector<4x4xf32> to vector<4xf32>
    %49 = vector.shape_cast %48 : vector<4xf32> to vector<1x4xf32>
    %50 = vector.extract_strided_slice %35 {offsets = [1, 0], sizes = [1, 4], strides = [1, 1]} : vector<6x4xf32> to vector<1x4xf32>
    %51 = arith.addf %49, %50 : vector<1x4xf32>
    %52 = tpu.concatenate %43, %51 in 0 : vector<1x4xf32>, vector<1x4xf32> -> vector<2x4xf32>
    %cst_27 = arith.constant dense<0.000000e+00> : vector<2xf32>
    %53 = vector.multi_reduction <add>, %52, %cst_27 [1] : vector<2x4xf32> to vector<2xf32>
    %54 = vector.shape_cast %53 : vector<2xf32> to vector<2x1xf32>
    %cst_28 = arith.constant 4.000000e+00 : f32
    %55 = vector.broadcast %cst_28 : f32 to vector<2x1xf32>
    %56 = arith.divf %54, %55 : vector<2x1xf32>
    %57 = vector.broadcast %56 : vector<2x1xf32> to vector<2x4xf32>
    %58 = arith.subf %52, %57 : vector<2x4xf32>
    %59 = arith.mulf %58, %58 : vector<2x4xf32>
    %cst_29 = arith.constant dense<0.000000e+00> : vector<2xf32>
    %60 = vector.multi_reduction <add>, %59, %cst_29 [1] : vector<2x4xf32> to vector<2xf32>
    %61 = vector.shape_cast %60 : vector<2xf32> to vector<2x1xf32>
    %cst_30 = arith.constant 4.000000e+00 : f32
    %62 = vector.broadcast %cst_30 : f32 to vector<2x1xf32>
    %63 = arith.divf %61, %62 : vector<2x1xf32>
    %64 = vector.broadcast %56 : vector<2x1xf32> to vector<2x4xf32>
    %65 = arith.subf %52, %64 : vector<2x4xf32>
    %cst_31 = arith.constant 9.99999974E-6 : f32
    %66 = vector.broadcast %cst_31 : f32 to vector<2x1xf32>
    %67 = arith.addf %63, %66 : vector<2x1xf32>
    %68 = math.rsqrt %67 : vector<2x1xf32>
    %69 = vector.broadcast %68 : vector<2x1xf32> to vector<2x4xf32>
    %70 = arith.mulf %65, %69 : vector<2x4xf32>
    %71 = vector.extract_strided_slice %35 {offsets = [2, 0], sizes = [2, 4], strides = [1, 1]} : vector<6x4xf32> to vector<2x4xf32>
    %72 = arith.mulf %70, %71 : vector<2x4xf32>
    %73 = vector.extract_strided_slice %35 {offsets = [4, 0], sizes = [2, 4], strides = [1, 1]} : vector<6x4xf32> to vector<2x4xf32>
    %74 = arith.addf %72, %73 : vector<2x4xf32>
    %cst_32 = arith.constant 0.000000e+00 : f32
    %75 = vector.broadcast %cst_32 : f32 to vector<2x4xf32>
    %76 = arith.maximumf %74, %75 : vector<2x4xf32>
    %c2 = arith.constant 2 : index
    %c0_33 = arith.constant 0 : index
    %c0_34 = arith.constant 0 : index
    %77 = vector.load %arg6[%c2, %c0_33, %c0_34] : memref<4x4x4xf32, #tpu.memory_space<vmem>>, vector<1x4x4xf32>
    %78 = vector.shape_cast %77 : vector<1x4x4xf32> to vector<4x4xf32>
    %79 = vector.extract_strided_slice %76 {offsets = [0, 0], sizes = [1, 4], strides = [1, 1]} : vector<2x4xf32> to vector<1x4xf32>
    %80 = vector.broadcast %79 : vector<1x4xf32> to vector<4x4xf32>
    %81 = arith.mulf %78, %80 : vector<4x4xf32>
    %cst_35 = arith.constant dense<0.000000e+00> : vector<4xf32>
    %82 = vector.multi_reduction <add>, %81, %cst_35 [1] : vector<4x4xf32> to vector<4xf32>
    %83 = vector.shape_cast %82 : vector<4xf32> to vector<4x1xf32>
    %84 = vector.extract_strided_slice %8 {offsets = [0, 1], sizes = [4, 1], strides = [1, 1]} : vector<4x3xf32> to vector<4x1xf32>
    %85 = arith.addf %83, %84 : vector<4x1xf32>
    %86 = arith.negf %85 : vector<4x1xf32>
    %87 = math.exp %86 : vector<4x1xf32>
    %cst_36 = arith.constant 1.000000e+00 : f32
    %88 = vector.broadcast %cst_36 : f32 to vector<4x1xf32>
    %89 = arith.addf %88, %87 : vector<4x1xf32>
    %90 = arith.divf %88, %89 : vector<4x1xf32>
    %c3 = arith.constant 3 : index
    %c0_37 = arith.constant 0 : index
    %c0_38 = arith.constant 0 : index
    %91 = vector.load %arg6[%c3, %c0_37, %c0_38] : memref<4x4x4xf32, #tpu.memory_space<vmem>>, vector<1x4x4xf32>
    %92 = vector.shape_cast %91 : vector<1x4x4xf32> to vector<4x4xf32>
    %93 = vector.extract_strided_slice %76 {offsets = [1, 0], sizes = [1, 4], strides = [1, 1]} : vector<2x4xf32> to vector<1x4xf32>
    %94 = vector.broadcast %93 : vector<1x4xf32> to vector<4x4xf32>
    %95 = arith.mulf %92, %94 : vector<4x4xf32>
    %cst_39 = arith.constant dense<0.000000e+00> : vector<4xf32>
    %96 = vector.multi_reduction <add>, %95, %cst_39 [1] : vector<4x4xf32> to vector<4xf32>
    %97 = vector.shape_cast %96 : vector<4xf32> to vector<4x1xf32>
    %98 = vector.extract_strided_slice %8 {offsets = [0, 2], sizes = [4, 1], strides = [1, 1]} : vector<4x3xf32> to vector<4x1xf32>
    %99 = arith.addf %97, %98 : vector<4x1xf32>
    %100 = vector.shape_cast %90 : vector<4x1xf32> to vector<4x1x1xf32>
    %101 = vector.broadcast %100 : vector<4x1x1xf32> to vector<4x8x32xf32>
    %102 = arith.mulf %7, %101 : vector<4x8x32xf32>
    %103 = vector.shape_cast %99 : vector<4x1xf32> to vector<4x1x1xf32>
    %104 = vector.broadcast %103 : vector<4x1x1xf32> to vector<4x8x32xf32>
    %105 = arith.addf %102, %104 : vector<4x8x32xf32>
    %c0_40 = arith.constant 0 : index
    %c0_41 = arith.constant 0 : index
    %c0_42 = arith.constant 0 : index
    %c0_43 = arith.constant 0 : index
    %106 = vector.load %arg7[%c0_40, %c0_41, %c0_42, %c0_43] : memref<1x4x8x32xf32, #tpu.memory_space<vmem>>, vector<1x4x8x32xf32>
    %107 = vector.shape_cast %106 : vector<1x4x8x32xf32> to vector<4x8x32xf32>
    %108 = vector.shape_cast %105 : vector<4x8x32xf32> to vector<1x4x8x32xf32>
    tpu.vector_store %arg7[%c0_40, %c0_41, %c0_42, %c0_43], %108 {strides = array<i32>} : memref<1x4x8x32xf32, #tpu.memory_space<vmem>>, vector<1x4x8x32xf32>,
    return
  }
  func.func @transform_0(%arg0: i32) -> (i32, i32, i32, i32) {
    %c0_i32 = arith.constant 0 : i32
    %c0_i32_0 = arith.constant 0 : i32
    %c0_i32_1 = arith.constant 0 : i32
    %c0_i32_2 = arith.constant 0 : i32
    return %arg0, %c0_i32, %c0_i32_0, %c0_i32_1 : i32, i32, i32, i32
  }
  func.func @transform_1(%arg0: i32) -> (i32, i32, i32) {
    %c0_i32 = arith.constant 0 : i32
    %c0_i32_0 = arith.constant 0 : i32
    %c0_i32_1 = arith.constant 0 : i32
    return %arg0, %c0_i32, %c0_i32_0 : i32, i32, i32
  }
  func.func @transform_2(%arg0: i32) -> (i32, i32) {
    %c0_i32 = arith.constant 0 : i32
    %c0_i32_0 = arith.constant 0 : i32
    %c0_i32_1 = arith.constant 0 : i32
    return %c0_i32, %c0_i32_0 : i32, i32
  }
  func.func @transform_3(%arg0: i32) -> (i32, i32) {
    %c0_i32 = arith.constant 0 : i32
    %c0_i32_0 = arith.constant 0 : i32
    %c0_i32_1 = arith.constant 0 : i32
    return %c0_i32, %c0_i32_0 : i32, i32
  }
  func.func @transform_4(%arg0: i32) -> (i32, i32) {
    %c0_i32 = arith.constant 0 : i32
    %c0_i32_0 = arith.constant 0 : i32
    %c0_i32_1 = arith.constant 0 : i32
    return %c0_i32, %c0_i32_0 : i32, i32
  }
  func.func @transform_5(%arg0: i32) -> (i32, i32, i32) {
    %c0_i32 = arith.constant 0 : i32
    %c0_i32_0 = arith.constant 0 : i32
    %c0_i32_1 = arith.constant 0 : i32
    %c0_i32_2 = arith.constant 0 : i32
    return %c0_i32, %c0_i32_0, %c0_i32_1 : i32, i32, i32
  }
  func.func @transform_6(%arg0: i32) -> (i32, i32, i32, i32) {
    %c0_i32 = arith.constant 0 : i32
    %c0_i32_0 = arith.constant 0 : i32
    %c0_i32_1 = arith.constant 0 : i32
    %c0_i32_2 = arith.constant 0 : i32
    return %arg0, %c0_i32, %c0_i32_0, %c0_i32_1 : i32, i32, i32, i32
  }
}

</mosaic_0001>

<bundles_post_ra>
// kernel: tpu_custom_call.1
= control target key start
LH: loop header
LB: loop body
LE: loop exit
PB: predicated region body
PF: predicated region fallthrough
CT: control target
= control target key end

     0   :  { %11 = vsyncpa [#allocation3], 0  ;;  %s1830_s0 = inlined_call_operand.vmem [shape: f32[2,4,8,32], index: 0, kind: input, shape index: {}]   ;;  %s1831_s1 = inlined_call_operand.vmem [shape: f32[2,32,8], index: 1, kind: input, shape index: {}]   ;;  %s1832_s2 = inlined_call_operand.vmem [shape: f32[8,32], index: 2, kind: input, shape index: {}]   ;;  %s1833_s3 = inlined_call_operand.vmem [shape: f32[6,4], index: 3, kind: input, shape index: {}]   ;;  %s1834_s4 = inlined_call_operand.vmem [shape: f32[4,3], index: 4, kind: input, shape index: {}]   ;;  %s1835_s5 = inlined_call_operand.vmem [shape: f32[4,4,4], index: 5, kind: input, shape index: {}]   ;;  %s1836_s6 = inlined_call_operand.hbm [shape: f32[2,4,8,32], index: 6, kind: output, shape index: {}]  }
   0x1   :  { %13 = vsyncpa [#allocation3 + $0x1], 0  ;;  %s1575_s21 = smov 0   ;;  %s1577_s22 = smov 0  }
   0x2   :  { %s1579_s23 = smov 0   ;;  %s1581_s24 = smov 0  }
   0x3 LB: > { %s1596_s25 = sadd.s32 4294967295, %s1531_s24   ;;  %s1309_s26 = sadd.s32 4294967294, %s1531_s24   ;;  %s1531_s24 = sphi %s1581_s24, %s1842_s24   ;;  %s1527_s23 = sphi %s1579_s23, %s1841_s23   ;;  %s1523_s22 = sphi %s1577_s22, %s1840_s22   ;;  %s1519_s21 = sphi %s1575_s21, %s1839_s21  }
   0x4   : > { %s1600_s27 = sadd.s32 1, %s1531_s24   ;;  %s162_s28 = sadd.s32 1, %s1527_s23 }
   0x5   : > { %s159_s29 = ssub.s32 %s1531_s24, %s1600_s27  ;;  %p172_p0 = scmp.ne.s32.totalorder %s1527_s23, %s1523_s22 }
   0x6   : > { %p160_p1 = scmp.eq.s32.totalorder %s159_s29, 0  ;;  %p173_p2 = scmp.eq.s32.totalorder %s1596_s25, 1 }
   0x7   : > { %p178_p3 = scmp.ne.s32.totalorder %s1523_s22, %s1519_s21  ;;  %p179_p4 = scmp.eq.s32.totalorder %s1309_s26, 1 }
   0x8   : > { %s1611_s30 = scalar_select %p160_p1, %s1527_s23, %s162_s28  }
   0x9   : > { %p1613_p5 = por %p173_p2, %p172_p0  ;;  %p1617_p6 = por %p179_p4, %p178_p3 }
   0xa   : > { %p1312_p7 = scmp.ge.s32.totalorder %s1531_s24, 1  ;;  %p225_p8 = scmp.lt.s32.totalorder %s1531_s24, 3 }
   0xc   : > { %p226_p9 = pnand %p1312_p7, %p225_p8 }
   0xd   : > { %p260_p10 = scmp.lt.s32.totalorder (!%p226_p9), %s1596_s25, 1  ;;  %s257_s16 = sand.u32 (!%p226_p9), 1, %s1523_s22  }
   0xe   : > { %229 = sbr.rel (%p226_p9) target bundleno = 1281 (0x501), region = 44  ;;  %s1313_s17 = sshll.u32 (!%p226_p9), %s257_s16, 5 }
   0xf   : > { %s259_s18 = scalar_lea.vmem (!%p226_p9), [#allocation2], %s1313_s17  ;;  %s1790_s9 = scalar_lea.sflag (!%p226_p9), [#allocation3], %s257_s16 }
  0x10   : > { %s1235_s19 = sshll.u32 (!%p226_p9), %s259_s18, 4  ;;  %s1782_s19 = int_to_ptr.vmem [resolvable:$true] %s1235_s19 }
  0x11   : > { %s1471_s10 = scalar_lea.vmem (!%p226_p9), %s1782_s19, 512 }
  0x12   : > { %p1472_p11 = scmp.ne.s32.totalorder (!%p226_p9), %s1782_s19, %s1471_s10 }
  0x13   : > { %v278_v0 = vld [vmem:[%s1832_s2] sm:$0xff]  ;;  %v876_v1 = vlaneseq  ;;  %v1533_v3 = vmov 0   ;;  %s1630_s11 = scalar_select %p260_p10, %s1596_s25, 1  ;;  %v1534_v4 = vmov 1966171168   ;;  %vm279_vm0 = vcmask 64512  }
  0x14   : > { %v1627_v2 = vand.u32 4294901760, %v278_v0  ;;  %1453 = vset.pattern.permute.xlu0 %v1533_v3  ;;  %1454 = vset.pattern.permute.xlu1 %v1533_v3  ;;  %v874_v5 = vunpack.c.l.s4 %v1534_v4  ;;  %v1652_v10 = vld [vmem:[%s1834_s4] sm:$0xf]  ;;  %vm933_vm1 = vcmask 261120   ;;  %vm1014_vm2 = vcmask 1041409   ;;  %p1473_p12 = pnand %p1472_p11, %p1613_p5 }
  0x15   : > { %v1632_v6 = vshrl.u32 %v876_v1, 7  ;;  %s1327_s12 = sshll.u32 %s1630_s11, 5  ;;  %vm1016_vm3 = vcmask 1042434   ;;  %vm1018_vm4 = vcmask 1043459   ;;  %vm1022_vm5 = vcmask 27648  }
  0x16   : > { %1360 = vmatprep.subr.mxu0 %v1627_v2  ;;  %v1636_v7 = vsub.f32 %v278_v0, %v1627_v2  ;;  %v875_v8 = vunpack.c.0.s8 %v874_v5  ;;  %s269_s15 = scalar_lea.vmem %s1831_s1, %s1327_s12  ;;  %s264_s20 = scalar_lea.vmem %s1830_s0, %s1327_s12  ;;  %vm1042_vm6 = vcmask 1040384   ;;  %vm1044_vm7 = vcmask 25600  }
  0x17   : > { %1361 = vmatpush3.msra.mxu0 %v1627_v2  ;;  %v274_v11 = vld [vmem:[%s269_s15] sm:$0xff]  ;;  %v275_v12 = vld [vmem:[%s269_s15 + $0x8] sm:$0xff]  ;;  %v276_v13 = vld [vmem:[%s269_s15 + $0x10] sm:$0xff]  ;;  %v1674_v27 = vsub.s32 0, %v1632_v6  ;;  %p1474_p13 = pneg %p1473_p12 }
  0x18   : > { %v1641_v9 = vand.u32 4294901760, %v1636_v7  ;;  %1376 = vmatprep.subr.mxu0 %v1636_v7  ;;  %v1655_v14 = vsub.s32 %v875_v8, %v1632_v6  ;;  %v281_v16 = vsel %vm279_vm0, %v274_v11, 0  ;;  %v284_v17 = vsel %vm279_vm0, %v275_v12, 0  ;;  %v277_v19 = vld [vmem:[%s269_s15 + $0x18] sm:$0xff] }
  0x19   : > { %v287_v18 = vsel %vm279_vm0, %v276_v13, 0  ;;  %v1662_v20 = vand.u32 4294901760, %v281_v16  ;;  %v1664_v21 = vand.u32 4294901760, %v284_v17  ;;  %v290_v23 = vsel %vm279_vm0, %v277_v19, 0 }
  0x1a   : > { %v432_v15 = vsub.f32 %v1636_v7, %v1641_v9  ;;  %v1666_v22 = vand.u32 4294901760, %v287_v18  ;;  %v1669_v25 = vand.u32 4294901760, %v290_v23  ;;  %v879_v26 = vrot.slane %v1652_v10, %v1655_v14 }
  0x1b   : > { %v359_v28 = vsub.f32 %v281_v16, %v1662_v20  ;;  %1370 = vmatprep.mubr.f32.mxu1 %v1662_v20  ;;  %v369_v29 = vsub.f32 %v284_v17, %v1664_v21 }
  0x1c   : > { %v433_v24 = vand.u32 4294901760, %v432_v15  ;;  %v379_v30 = vsub.f32 %v287_v18, %v1666_v22  ;;  %v389_v31 = vsub.f32 %v290_v23, %v1669_v25  ;;  %v887_v32 = vrot.slane %v879_v26, %v1655_v14  ;;  %v271_v23 = vld [vmem:[%s264_s20 + $0x8] sm:$0xff] }
  0x1d   : > { %v880_v33 = vcombine.high %v879_v26, %v879_v26  ;;  %v360_v34 = vand.u32 4294901760, %v359_v28  ;;  %v370_v35 = vand.u32 4294901760, %v369_v29 }
  0x1e   : > { %1368 = vmatprep.subr.mxu1 %v433_v24  ;;  %v380_v36 = vand.u32 4294901760, %v379_v30  ;;  %v390_v37 = vand.u32 4294901760, %v389_v31  ;;  %v900_v38 = vrot.slane %v887_v32, %v1674_v27  ;;  %v895_v39 = vcombine.high %v887_v32, %v887_v32 }
  0x1f   : > { %1369 = vmatpush3.msra.mxu1 %v433_v24  ;;  %v894_v40 = vrot.slane %v880_v33, %v1655_v14  ;;  %v361_v41 = vsub.f32 %v359_v28, %v360_v34  ;;  %v371_v42 = vsub.f32 %v369_v29, %v370_v35 }
  0x20   : > { %1371 = vmatmul.mubr.f32.vlgmr.msra.gmra.mxu1 %v1664_v21  ;;  %1384 = vmatprep.subr.mxu1 %v1627_v2  ;;  %v381_v43 = vsub.f32 %v379_v30, %v380_v36  ;;  %v391_v44 = vsub.f32 %v389_v31, %v390_v37  ;;  %v908_v45 = vrot.slane %v895_v39, %v1674_v27 }
  0x21   : > { %1385 = vmatpush3.msra.mxu1 %v1627_v2  ;;  %1373 = vmatprep.mubr.f32.mxu1 %v1666_v22  ;;  %v904_v46 = vrot.slane %v894_v40, %v1674_v27  ;;  %v362_v47 = vand.u32 4294901760, %v361_v41  ;;  %v372_v48 = vand.u32 4294901760, %v371_v42  ;;  %v896_v50 = vcombine.high %v894_v40, %v894_v40 }
  0x22   : > { %1400 = vmatprep.subr.mxu1 %v1627_v2  ;;  %914 = vperm.xlu0 %1453, %v900_v38   ;;  %v382_v49 = vand.u32 4294901760, %v381_v43  ;;  %v392_v51 = vand.u32 4294901760, %v391_v44  ;;  %v272_v43 = vld [vmem:[%s264_s20 + $0x10] sm:$0xff] }
  0x23   : > { %922 = vperm.xlu1 %1454, %v908_v45   ;;  %1362 = vmatprep.mubr.f32.mxu0 %v362_v47  ;;  %v912_v52 = vrot.slane %v896_v50, %v1674_v27 }
  0x24   : > { %1374 = vmatmul.mubr.f32.gmra.mxu1 %v1669_v25  ;;  %1363 = vmatmul.mubr.f32.vlgmr.msra.gmra.mxu0 %v372_v48 }
  0x25   : > { %1386 = vmatprep.mubr.f32.mxu1 %v360_v34  ;;  %1377 = vmatpush3.msra.mxu0 %v1636_v7 }
  0x26   : > { %918 = vperm.xlu0 %1453, %v904_v46   ;;  %1365 = vmatprep.mubr.f32.mxu0 %v382_v49 }
  0x27   : > { %1392 = vmatprep.subr.mxu0 %v1641_v9  ;;  %926 = vperm.xlu1 %1454, %v912_v52  }
  0x28   : > { %1387 = vmatmul.mubr.f32.vlgmr.msra.gmra.mxu1 %v370_v35  ;;  %1366 = vmatmul.mubr.f32.gmra.mxu0 %v392_v51 }
  0x29   : > { %1401 = vmatpush3.msra.mxu1 %v1627_v2  ;;  %1389 = vmatprep.mubr.f32.mxu1 %v380_v36 }
  0x2a   : > { %1378 = vmatprep.mubr.f32.mxu0 %v359_v28 }
  0x2c   : > { %1390 = vmatmul.mubr.f32.gmra.mxu1 %v390_v37  ;;  %1379 = vmatmul.mubr.f32.vlgmr.msra.gmra.mxu0 %v369_v29  ;;  %v273_v37 = vld [vmem:[%s264_s20 + $0x18] sm:$0xff] }
  0x2d   : > { %1402 = vmatprep.mubr.f32.mxu1 %v1662_v20  ;;  %1393 = vmatpush3.msra.mxu0 %v1641_v9 }
  0x2e   : > { %1381 = vmatprep.mubr.f32.mxu0 %v379_v30  ;;  %v270_v30 = vld [vmem:[%s264_s20] sm:$0xff]  ;;  %s1329_s20 = sshll.u32 %s1596_s25, 9  ;;  %s1537_s25 = smov [#allocation2]  }
  0x2f   : > { %s1787_s29 = scalar_lea.hbm %s1836_s6, %s1329_s20  ;;  %s1475_s11 = sshll.u32 %s1537_s25, 4  ;;  %s1476_s11 = int_to_ptr.vmem [resolvable:$false] %s1475_s11 }
  0x30   : > { %1403 = vmatmul.mubr.f32.vlgmr.msra.gmra.mxu1 %v1664_v21  ;;  %1382 = vmatmul.mubr.f32.gmra.mxu0 %v389_v31  ;;  %s1477_s12 = scalar_lea.vmem %s1476_s11, 1024  ;;  %p1478_p0 = scmp.lt.s32.totalorder %s1782_s19, %s1476_s11 }
  0x31   : > { %1405 = vmatprep.mubr.f32.mxu1 %v1666_v22  ;;  %1394 = vmatprep.mubr.f32.mxu0 %v1662_v20  ;;  %p1479_p1 = scmp.lt.s32.totalorder %s1477_s12, %s1471_s10 }
  0x33   : > { %p1480_p2 = por %p1479_p1, %p1478_p0 }
  0x34   : > { %1406 = vmatmul.mubr.f32.gmra.mxu1 %v1669_v25  ;;  %1395 = vmatmul.mubr.f32.vlgmr.msra.gmra.mxu0 %v1664_v21 }
  0x35   : > { %1397 = vmatprep.mubr.f32.mxu0 %v1666_v22  ;;  %p1481_p3 = pnand %p1480_p2, %p1474_p13 }
  0x38   : > { %1398 = vmatmul.mubr.f32.gmra.mxu0 %v1669_v25 }
  0x9d   : > { %v915_v17 = vpop.permute.xlu0 %914 }
  0x9e   : > { %v923_v29 = vpop.permute.xlu1 %922 }
  0xa1   : > { %v919_v38 = vpop.permute.xlu0 %918 }
  0xa2   : > { %v927_v49 = vpop.permute.xlu1 %926 }
  0xe0   : > { %v1372_v53 = vpop.f32.mrf.mxu1 }
  0xe2   : > { %v470_v54 = vpop.f32.mrf.mxu1 }
  0xe4   : > { %v1375_v55 = vpop.f32.mrf.mxu1  ;;  %v1364_v56 = vpop.f32.mrf.mxu0 }
  0xe5   : > { %v477_v2 = vadd.f32 %v1372_v53, %v1364_v56 }
  0xe6   : > { %v482_v57 = vpop.f32.mrf.mxu1  ;;  %v364_v58 = vpop.f32.mrf.mxu0 }
  0xe7   : > { %v471_v4 = vadd.f32 %v470_v54, %v364_v58 }
  0xe8   : > { %v1388_v59 = vpop.f32.mrf.mxu1  ;;  %v1367_v60 = vpop.f32.mrf.mxu0 }
  0xe9   : > { %v489_v9 = vadd.f32 %v1375_v55, %v1367_v60 }
  0xea   : > { %v657_v61 = vpop.f32.mrf.mxu1  ;;  %v384_v62 = vpop.f32.mrf.mxu0 }
  0xeb   : > { %v483_v13 = vadd.f32 %v482_v57, %v384_v62 }
  0xec   : > { %v1391_v63 = vpop.f32.mrf.mxu1  ;;  %v1380_v0 = vpop.f32.mrf.mxu0 }
  0xed   : > { %v570_v5 = vadd.f32 %v1380_v0, %v477_v2 }
  0xee   : > { %v673_v1 = vpop.f32.mrf.mxu1  ;;  %v562_v3 = vpop.f32.mrf.mxu0 }
  0xef   : > { %v563_v11 = vadd.f32 %v562_v3, %v471_v4  ;;  %v666_v15 = vadd.f32 %v1388_v59, %v570_v5 }
  0xf0   : > { %v1383_v7 = vpop.f32.mrf.mxu0  ;;  %v1404_v8 = vpop.f32.mrf.mxu1 }
  0xf1   : > { %v584_v16 = vadd.f32 %v1383_v7, %v489_v9  ;;  %v658_v20 = vadd.f32 %v657_v61, %v563_v11 }
  0xf2   : > { %v576_v12 = vpop.f32.mrf.mxu0  ;;  %v845_v19 = vpop.f32.mrf.mxu1 }
  0xf3   : > { %v577_v21 = vadd.f32 %v576_v12, %v483_v13  ;;  %v682_v25 = vadd.f32 %v1391_v63, %v584_v16 }
  0xf4   : > { %v1396_v18 = vpop.f32.mrf.mxu0  ;;  %v1407_v32 = vpop.f32.mrf.mxu1 }
  0xf5   : > { %v762_v22 = vadd.f32 %v1396_v18, %v666_v15  ;;  %v674_v33 = vadd.f32 %v673_v1, %v577_v21 }
  0xf6   : > { %v755_v24 = vpop.f32.mrf.mxu0  ;;  %v857_v44 = vpop.f32.mrf.mxu1 }
  0xf7   : > { %v852_v26 = vadd.f32 %v1404_v8, %v762_v22  ;;  %v756_v28 = vadd.f32 %v755_v24, %v658_v20 }
  0xf8   : > { %v1399_v31 = vpop.f32.mrf.mxu0 }
  0xf9   : > { %v1710_v34 = vmul.f32 %v852_v26, %v271_v23  ;;  %v846_v35 = vadd.f32 %v845_v19, %v756_v28  ;;  %v774_v36 = vadd.f32 %v1399_v31, %v682_v25 }
  0xfa   : > { %v767_v39 = vpop.f32.mrf.mxu0 }
  0xfb   : > { %v1712_v40 = vmul.f32 %v846_v35, %v270_v30  ;;  %v864_v41 = vadd.f32 %v1407_v32, %v774_v36  ;;  %v768_v42 = vadd.f32 %v767_v39, %v674_v33  ;;  %v930_v47 = vmul.f32 %v919_v38, %v1710_v34 }
  0xfd   : > { %v1714_v45 = vmul.f32 %v864_v41, %v273_v37  ;;  %v929_v46 = vmul.f32 %v915_v17, %v1712_v40  ;;  %v858_v48 = vadd.f32 %v857_v44, %v768_v42  ;;  %v935_v52 = vsel %vm933_vm1, %v930_v47, 0.0 }
  0xff   : > { %v934_v50 = vsel %vm933_vm1, %v929_v46, 0.0  ;;  %v1719_v51 = vmul.f32 %v858_v48, %v272_v43  ;;  %v932_v54 = vmul.f32 %v927_v49, %v1714_v45 }
 0x100   : > { %v936_v55 = vadd.f32 %v935_v52, %v934_v50 }
 0x101   : > { %v931_v53 = vmul.f32 %v923_v29, %v1719_v51  ;;  %v939_v58 = vsel %vm933_vm1, %v932_v54, 0.0 }
 0x103   : > { %v937_v56 = vsel %vm933_vm1, %v931_v53, 0.0 }
 0x104   : > { %v938_v57 = vadd.f32 %v937_v56, %v936_v55 }
 0x106   : > { %v940_v59 = vadd.f32 %v939_v58, %v938_v57 }
 0x108   : > { %v941_v60 = vsel %vm933_vm1, %v940_v59, -inf }
 0x109   : > { %942 = vmax.xlane.f32.xlu0 %v941_v60 }
 0x192   : > { %v943_v61 = vpop.xlane.xlu0 %942 }
 0x193   : > { %v944_v62 = vrot.slane %v943_v61, 4 }
 0x195   : > { %v945_v63 = vmax.f32 %v943_v61, %v944_v62 }
 0x197   : > { %v946_v0 = vrot.slane %v945_v63, 2 }
 0x199   : > { %v947_v1 = vmax.f32 %v945_v63, %v946_v0  ;;  %v1009_v0 = vld [vmem:[%s1835_s5] sm:$0xf] }
 0x19b   : > { %v948_v2 = vrot.slane %v947_v1, 1 }
 0x19d   : > { %v949_v3 = vmax.f32 %v947_v1, %v948_v2  ;;  %v1318_v1 = vld [vmem:[%s1835_s5 + $0x4] sm:$0xf] }
 0x19f   : > { %v950_v4 = vsub.f32 %v940_v59, %v949_v3 }
 0x1a1   : > { %v951_v5 = vmul.f32 1.442695, %v950_v4 }
 0x1a3   : > { %1461 = vpow2.f32 %v951_v5 }
 0x1b0   : > { %v1462_v7 = vpop.eup %1461 }
 0x1b1   : > { %v953_v8 = vsel %vm933_vm1, %v1462_v7, 0.0  ;;  %v962_v9 = vmul.f32 %v1462_v7, %v1712_v40  ;;  %v964_v11 = vmul.f32 %v1462_v7, %v1719_v51  ;;  %v963_v13 = vmul.f32 %v1462_v7, %v1710_v34 }
 0x1b2   : > { %954 = vadd.xlane.f32.xlu1 %v953_v8  ;;  %v965_v17 = vmul.f32 %v1462_v7, %v1714_v45 }
 0x1b3   : > { %v966_v12 = vsel %vm933_vm1, %v962_v9, 0.0  ;;  %v972_v15 = vsel %vm933_vm1, %v964_v11, 0.0  ;;  %v969_v16 = vsel %vm933_vm1, %v963_v13, 0.0 }
 0x1b4   : > { %967 = vadd.xlane.f32.xlu0 %v966_v12  ;;  %v975_v18 = vsel %vm933_vm1, %v965_v17, 0.0 }
 0x1b6   : > { %973 = vadd.xlane.f32.xlu1 %v972_v15 }
 0x1b8   : > { %970 = vadd.xlane.f32.xlu0 %v969_v16 }
 0x1bc   : > { %976 = vadd.xlane.f32.xlu0 %v975_v18 }
 0x23b   : > { %v955_v19 = vpop.xlane.xlu1 %954 }
 0x23c   : > { %v956_v20 = vrot.slane %v955_v19, 4 }
 0x23d   : > { %v968_v21 = vpop.xlane.xlu0 %967 }
 0x23e   : > { %v957_v22 = vadd.f32 %v956_v20, %v955_v19  ;;  %v978_v25 = vrot.slane %v968_v21, 4 }
 0x23f   : > { %v974_v23 = vpop.xlane.xlu1 %973 }
 0x240   : > { %v958_v24 = vrot.slane %v957_v22, 2  ;;  %v990_v26 = vrot.slane %v974_v23, 4  ;;  %v979_v32 = vadd.f32 %v978_v25, %v968_v21 }
 0x241   : > { %v971_v28 = vpop.xlane.xlu0 %970 }
 0x242   : > { %v959_v29 = vadd.f32 %v958_v24, %v957_v22  ;;  %v984_v30 = vrot.slane %v971_v28, 4  ;;  %v991_v33 = vadd.f32 %v990_v26, %v974_v23  ;;  %v980_v39 = vrot.slane %v979_v32, 2  ;;  %v1008_v22 = vld [vmem:[%s1833_s3] sm:$0x3f] }
 0x244   : > { %v960_v31 = vrot.slane %v959_v29, 1  ;;  %v985_v35 = vadd.f32 %v984_v30, %v971_v28  ;;  %v992_v41 = vrot.slane %v991_v33, 2  ;;  %v981_v46 = vadd.f32 %v980_v39, %v979_v32 }
 0x245   : > { %v977_v36 = vpop.xlane.xlu0 %976  ;;  %v1060_v39 = vrot.slane %v1008_v22, 2 }
 0x246   : > { %v961_v37 = vadd.f32 %v960_v31, %v959_v29  ;;  %v996_v38 = vrot.slane %v977_v36, 4  ;;  %v986_v42 = vrot.slane %v985_v35, 2  ;;  %v993_v47 = vadd.f32 %v992_v41, %v991_v33 }
 0x247   : > { %v982_v50 = vrot.slane %v981_v46, 1 }
 0x248   : > { %1463 = vrcp.f32 %v961_v37  ;;  %v997_v43 = vadd.f32 %v996_v38, %v977_v36  ;;  %v987_v48 = vadd.f32 %v986_v42, %v985_v35  ;;  %v994_v52 = vrot.slane %v993_v47, 1 }
 0x249   : > { %v983_v55 = vadd.f32 %v982_v50, %v981_v46  ;;  %v1319_v50 = vld [vmem:[%s1835_s5 + $0x8] sm:$0xf] }
 0x24a   : > { %v998_v44 = vrot.slane %v997_v43, 2  ;;  %v988_v53 = vrot.slane %v987_v48, 1  ;;  %v995_v56 = vadd.f32 %v994_v52, %v993_v47  ;;  %v1088_v47 = vsub.s32 1, %v1632_v6 }
 0x24b   : > { %v1535_v6 = vmov 1  }
 0x24c   : > { %v999_v49 = vadd.f32 %v998_v44, %v997_v43  ;;  %v989_v57 = vadd.f32 %v988_v53, %v987_v48  ;;  %v1063_v43 = vrot.slane %v1008_v22, 4  ;;  %1455 = vset.pattern.permute.xlu1 %v1535_v6  ;;  %1456 = vset.pattern.permute.xlu0 %v1535_v6 }
 0x24e   : > { %v1000_v54 = vrot.slane %v999_v49, 1 }
 0x250   : > { %v1001_v62 = vadd.f32 %v1000_v54, %v999_v49  ;;  %v1321_v49 = vld [vmem:[%s1835_s5 + $0xc] sm:$0xf] }
 0x255   : > { %v1464_v58 = vpop.eup %1463 }
 0x256   : > { %v1004_v59 = vmul.f32 %v1464_v58, %v983_v55  ;;  %v1006_v60 = vmul.f32 %v1464_v58, %v995_v56  ;;  %v1005_v61 = vmul.f32 %v1464_v58, %v989_v57  ;;  %v1007_v2 = vmul.f32 %v1464_v58, %v1001_v62 }
 0x258   : > { %v1015_v63 = vsel %vm1014_vm2, %v1005_v61, %v1004_v59 }
 0x259   : > { %v1017_v3 = vsel %vm1016_vm3, %v1006_v60, %v1015_v63 }
 0x25a   : > { %v1019_v4 = vsel %vm1018_vm4, %v1007_v2, %v1017_v3 }
 0x25b   : > { %v1021_v5 = vmul.f32 %v1019_v4, %v1009_v0  ;;  %v1033_v7 = vmul.f32 %v1318_v1, %v1019_v4 }
 0x25d   : > { %v1023_v8 = vsel %vm1022_vm5, %v1021_v5, 0.0  ;;  %v1034_v9 = vsel %vm1022_vm5, %v1033_v7, 0.0 }
 0x25e   : > { %v1024_v11 = vrot.slane %v1023_v8, 4  ;;  %v1035_v12 = vrot.slane %v1034_v9, 4 }
 0x260   : > { %v1025_v13 = vadd.f32 %v1024_v11, %v1023_v8  ;;  %v1036_v15 = vadd.f32 %v1035_v12, %v1034_v9 }
 0x262   : > { %v1026_v16 = vrot.slane %v1025_v13, 2  ;;  %v1037_v17 = vrot.slane %v1036_v15, 2 }
 0x264   : > { %v1027_v18 = vadd.f32 %v1026_v16, %v1025_v13  ;;  %v1038_v19 = vadd.f32 %v1037_v17, %v1036_v15  ;;  %v1536_v15 = vmov 2  }
 0x266   : > { %v1028_v20 = vrot.slane %v1027_v18, 1  ;;  %v1039_v21 = vrot.slane %v1038_v19, 1 }
 0x268   : > { %v1029_v23 = vadd.f32 %v1028_v20, %v1027_v18  ;;  %v1040_v24 = vadd.f32 %v1039_v21, %v1038_v19 }
 0x26a   : > { %v1030_v25 = vadd.f32 %v1029_v23, %v1008_v22  ;;  %v1041_v26 = vadd.f32 %v1040_v24, %v1008_v22 }
 0x26c   : > { %v1043_v28 = vsel %vm1042_vm6, %v1030_v25, %v1041_v26 }
 0x26d   : > { %v1045_v29 = vsel %vm1044_vm7, %v1043_v28, 0.0 }
 0x26e   : > { %1046 = vadd.xlane.f32.xlu1 %v1045_v29 }
 0x2f7   : > { %v1047_v30 = vpop.xlane.xlu1 %1046 }
 0x2f8   : > { %v1049_v31 = vmul.f32 0.25, %v1047_v30 }
 0x2fa   : > { %v1050_v32 = vsub.f32 %v1043_v28, %v1049_v31 }
 0x2fc   : > { %v1051_v33 = vmul.f32 %v1050_v32, %v1050_v32 }
 0x2fe   : > { %v1052_v35 = vsel %vm1044_vm7, %v1051_v33, 0.0 }
 0x2ff   : > { %1053 = vadd.xlane.f32.xlu0 %v1052_v35 }
 0x388   : > { %v1054_v36 = vpop.xlane.xlu0 %1053 }
 0x389   : > { %v1055_v37 = vmul.f32 0.25, %v1054_v36 }
 0x38b   : > { %v1056_v38 = vadd.f32 1e-05, %v1055_v37 }
 0x38d   : > { %1465 = vrsqrt.f32 %v1056_v38 }
 0x39a   : > { %v1466_v41 = vpop.eup %1465 }
 0x39b   : > { %v1058_v42 = vmul.f32 %v1466_v41, %v1050_v32 }
 0x39d   : > { %v1062_v44 = vmul.f32 %v1060_v39, %v1058_v42 }
 0x39f   : > { %v1065_v46 = vadd.f32 %v1063_v43, %v1062_v44 }
 0x3a1   : > { %v1066_v48 = vmax.f32 %v1065_v46, 0.0 }
 0x3a3   : > { %v1089_v52 = vrot.slane %v1066_v48, %v1088_v47  ;;  %v1072_v53 = vrot.slane %v1066_v48, %v1674_v27 }
 0x3a5   : > { %v1090_v54 = vmul.f32 %v1321_v49, %v1089_v52  ;;  %v1073_v55 = vmul.f32 %v1319_v50, %v1072_v53 }
 0x3a7   : > { %v1091_v56 = vsel %vm1022_vm5, %v1090_v54, 0.0  ;;  %v1074_v57 = vsel %vm1022_vm5, %v1073_v55, 0.0 }
 0x3a8   : > { %1092 = vadd.xlane.f32.xlu0 %v1091_v56  ;;  %1075 = vadd.xlane.f32.xlu1 %v1074_v57 }
 0x431   : > { %v1076_v58 = vpop.xlane.xlu1 %1075  ;;  %v1093_v63 = vpop.xlane.xlu0 %1092 }
 0x432   : > { %v1077_v59 = vadd.f32 %v1076_v58, %v1652_v10  ;;  %v1094_v0 = vadd.f32 %v1093_v63, %v1652_v10 }
 0x434   : > { %v1320_v60 = vmul.f32 -1.442695, %v1077_v59  ;;  %v1163_v3 = vrot.slane %v1094_v0, %v1655_v14 }
 0x436   : > { %1467 = vpow2.f32 %v1320_v60  ;;  %v1164_v9 = vcombine.high %v1163_v3, %v1163_v3  ;;  %v1171_v11 = vrot.slane %v1163_v3, %v1655_v14 }
 0x438   : > { %v1184_v10 = vrot.slane %v1171_v11, %v1674_v27  ;;  %v1178_v13 = vrot.slane %v1164_v9, %v1655_v14  ;;  %v1179_v17 = vcombine.high %v1171_v11, %v1171_v11 }
 0x43a   : > { %v1188_v16 = vrot.slane %v1178_v13, %v1674_v27  ;;  %v1192_v18 = vrot.slane %v1179_v17, %v1674_v27  ;;  %v1180_v22 = vcombine.high %v1178_v13, %v1178_v13 }
 0x43c   : > { %v1196_v23 = vrot.slane %v1180_v22, %v1674_v27 }
 0x443   : > { %v1468_v61 = vpop.eup %1467 }
 0x444   : > { %v1081_v62 = vadd.f32 1.0, %v1468_v61 }
 0x446   : > { %1469 = vrcp.f32 %v1081_v62 }
 0x453   : > { %v1470_v1 = vpop.eup %1469 }
 0x454   : > { %v1102_v2 = vrot.slane %v1470_v1, %v1655_v14 }
 0x456   : > { %v1110_v4 = vrot.slane %v1102_v2, %v1655_v14  ;;  %v1103_v5 = vcombine.high %v1102_v2, %v1102_v2 }
 0x458   : > { %v1123_v7 = vrot.slane %v1110_v4, %v1674_v27  ;;  %v1117_v8 = vrot.slane %v1103_v5, %v1655_v14  ;;  %v1118_v19 = vcombine.high %v1110_v4, %v1110_v4 }
 0x45a   : > { %1137 = vperm.xlu1 %1455, %v1123_v7   ;;  %v1127_v12 = vrot.slane %v1117_v8, %v1674_v27  ;;  %v1131_v20 = vrot.slane %v1118_v19, %v1674_v27  ;;  %v1119_v21 = vcombine.high %v1117_v8, %v1117_v8 }
 0x45c   : > { %1141 = vperm.xlu0 %1456, %v1127_v12   ;;  %v1135_v14 = vrot.slane %v1119_v21, %v1674_v27 }
 0x45e   : > { %1457 = vset.pattern.permute.xlu1 %v1536_v15 }
 0x45f   : > { %1198 = vperm.xlu1 %1457, %v1184_v10  }
 0x460   : > { %1460 = vset.pattern.permute.xlu0 %v1536_v15 }
 0x463   : > { %1202 = vperm.xlu1 %1457, %v1188_v16  }
 0x467   : > { %1206 = vperm.xlu1 %1457, %v1192_v18  }
 0x46b   : > { %1458 = vset.pattern.permute.xlu1 %v1535_v6 }
 0x46c   : > { %1145 = vperm.xlu1 %1458, %v1131_v20  }
 0x470   : > { %1149 = vperm.xlu1 %1458, %v1135_v14  }
 0x474   : > { %1459 = vset.pattern.permute.xlu1 %v1536_v15 }
 0x475   : > { %1210 = vperm.xlu1 %1459, %v1196_v23  }
 0x4d5   : > { %v1138_v24 = vpop.permute.xlu1 %1137 }
 0x4d6   : > { %v1152_v25 = vmul.f32 %v1138_v24, %v1712_v40 }
 0x4d7   : > { %v1142_v26 = vpop.permute.xlu0 %1141 }
 0x4d8   : > { %v1153_v30 = vmul.f32 %v1142_v26, %v1710_v34 }
 0x4da   : > { %v1199_v28 = vpop.permute.xlu1 %1198 }
 0x4db   : > { %v1213_v29 = vadd.f32 %v1199_v28, %v1152_v25 }
 0x4dd   : > { %1217 = vst.msk [vmem:[%s259_s18] sm:$0xff] %vm933_vm1, %v1213_v29 }
 0x4de   : > { %v1203_v31 = vpop.permute.xlu1 %1202 }
 0x4df   : > { %v1214_v32 = vadd.f32 %v1203_v31, %v1153_v30 }
 0x4e1   : > { %1218 = vst.msk [vmem:[%s259_s18 + $0x8] sm:$0xff] %vm933_vm1, %v1214_v32 }
 0x4e2   : > { %v1207_v27 = vpop.permute.xlu1 %1206 }
 0x4e7   : > { %v1146_v33 = vpop.permute.xlu1 %1145 }
 0x4e8   : > { %v1154_v35 = vmul.f32 %v1146_v33, %v1719_v51 }
 0x4ea   : > { %v1215_v36 = vadd.f32 %v1207_v27, %v1154_v35 }
 0x4eb   : > { %v1150_v40 = vpop.permute.xlu1 %1149 }
 0x4ec   : > { %1219 = vst.msk [vmem:[%s259_s18 + $0x10] sm:$0xff] %vm933_vm1, %v1215_v36  ;;  %v1155_v34 = vmul.f32 %v1150_v40, %v1714_v45 }
 0x4f0   : > { %v1211_v37 = vpop.permute.xlu1 %1210 }
 0x4f1   : > { %v1216_v38 = vadd.f32 %v1211_v37, %v1155_v34 }
 0x4f3   : > { %1220 = vst.msk [vmem:[%s259_s18 + $0x18] sm:$0xff] %vm933_vm1, %v1216_v38 }
 0x4f4   : > { %1484 = shalt.err (!%p1481_p3)
}
 0x4f5   : > { %s1485_s13 = scalar_lea.hbm %s1787_s29, 512  ;;  %s1489_s16 = scalar_lea.hbm %s1836_s6, 1024 }
 0x4f6   : > { %p1486_p4 = scmp.ne.s32.totalorder %s1787_s29, %s1485_s13  ;;  %p1490_p9 = scmp.lt.s32.totalorder %s1787_s29, %s1836_s6 }
 0x4f7   : > { %p1491_p10 = scmp.lt.s32.totalorder %s1489_s16, %s1485_s13 }
 0x4f8   : > { %p1487_p7 = pnand %p1486_p4, %p1613_p5 }
 0x4f9   : > { %p1492_p11 = por %p1491_p10, %p1490_p9 }
 0x4fa   : > { %p1488_p8 = pneg %p1487_p7 }
 0x4fc   : > { %p1493_p12 = pnand %p1492_p11, %p1488_p8 }
 0x4fe   : > { %1496 = shalt.err (!%p1493_p12)
}
 0x4ff   : > { %s1538_s20 = smov 128   ;;  %s1539_s26 = smov 8  }
 0x500   : > { %1408 = dma.vmem_to_hbm [thread:$0]  (%p1613_p5), %s1782_s19, 512, %s1787_s29, %s1790_s9, %s1538_s20, %s1538_s20, %s1539_s26  }
 0x501 PF: > { %p1414_p13 = scmp.ge.s32.totalorder %s1531_s24, 2  ;;  %s1250_s28 = sand.u32 1, %s1519_s21  }
 0x502   : > { %s1251_s10 = scalar_lea.sflag [#allocation3], %s1250_s28 }
 0x503   : > { %p1411_p0 = pnand %p1414_p13, %p1617_p6 }
 0x505   : > { %p1412_p1 = pneg %p1411_p0 }
 0x507   : > { %1514 = dma.done.wait (%p1412_p1), %s1251_s10, 512  }
 0x508   : > { %1516 = vsyncadd (%p1412_p1), %s1251_s10, 4294966784  ;;  %p16_p2 = scmp.ge.s32.totalorder %s1600_s27, 4   ;;  %s1839_s21 = smov %s1523_s22 }
 0x509   : > { %s1840_s22 = smov %s1527_s23  ;;  %s1841_s23 = smov %s1611_s30 }
 0x50a   : > { %s1842_s24 = smov %s1600_s27  ;;  %18 = sbr.rel (!%p16_p2) target bundleno = 3 (0x3), region = 85 }
 0x50f   :  { %1256 = vsyncpa [#allocation3], 1 }
 0x510   :  { %1258 = vsyncpa [#allocation3 + $0x1], 1 }

// kernel: tpu_custom_call.1
= control target key start
LH: loop header
LB: loop body
LE: loop exit
PB: predicated region body
PF: predicated region fallthrough
CT: control target
= control target key end

     0   :  { %11 = vsyncpa [#allocation3], 0  ;;  %s1830_s0 = inlined_call_operand.vmem [shape: f32[2,4,8,32], index: 0, kind: input, shape index: {}]   ;;  %s1831_s1 = inlined_call_operand.vmem [shape: f32[2,32,8], index: 1, kind: input, shape index: {}]   ;;  %s1832_s2 = inlined_call_operand.vmem [shape: f32[8,32], index: 2, kind: input, shape index: {}]   ;;  %s1833_s3 = inlined_call_operand.vmem [shape: f32[6,4], index: 3, kind: input, shape index: {}]   ;;  %s1834_s4 = inlined_call_operand.vmem [shape: f32[4,3], index: 4, kind: input, shape index: {}]   ;;  %s1835_s5 = inlined_call_operand.vmem [shape: f32[4,4,4], index: 5, kind: input, shape index: {}]   ;;  %s1836_s6 = inlined_call_operand.hbm [shape: f32[2,4,8,32], index: 6, kind: output, shape index: {}]  }
   0x1   :  { %13 = vsyncpa [#allocation3 + $0x1], 0  ;;  %s1575_s21 = smov 0   ;;  %s1577_s22 = smov 0  }
   0x2   :  { %s1579_s23 = smov 0   ;;  %s1581_s24 = smov 0  }
   0x3 LB: > { %s1596_s25 = sadd.s32 4294967295, %s1531_s24   ;;  %s1309_s26 = sadd.s32 4294967294, %s1531_s24   ;;  %s1531_s24 = sphi %s1581_s24, %s1842_s24   ;;  %s1527_s23 = sphi %s1579_s23, %s1841_s23   ;;  %s1523_s22 = sphi %s1577_s22, %s1840_s22   ;;  %s1519_s21 = sphi %s1575_s21, %s1839_s21  }
   0x4   : > { %s1600_s27 = sadd.s32 1, %s1531_s24   ;;  %s162_s28 = sadd.s32 1, %s1527_s23 }
   0x5   : > { %s159_s29 = ssub.s32 %s1531_s24, %s1600_s27  ;;  %p172_p0 = scmp.ne.s32.totalorder %s1527_s23, %s1523_s22 }
   0x6   : > { %p160_p1 = scmp.eq.s32.totalorder %s159_s29, 0  ;;  %p173_p2 = scmp.eq.s32.totalorder %s1596_s25, 1 }
   0x7   : > { %p178_p3 = scmp.ne.s32.totalorder %s1523_s22, %s1519_s21  ;;  %p179_p4 = scmp.eq.s32.totalorder %s1309_s26, 1 }
   0x8   : > { %s1611_s30 = scalar_select %p160_p1, %s1527_s23, %s162_s28  }
   0x9   : > { %p1613_p5 = por %p173_p2, %p172_p0  ;;  %p1617_p6 = por %p179_p4, %p178_p3 }
   0xa   : > { %p1312_p7 = scmp.ge.s32.totalorder %s1531_s24, 1  ;;  %p225_p8 = scmp.lt.s32.totalorder %s1531_s24, 3 }
   0xc   : > { %p226_p9 = pnand %p1312_p7, %p225_p8 }
   0xd   : > { %p260_p10 = scmp.lt.s32.totalorder (!%p226_p9), %s1596_s25, 1  ;;  %s257_s16 = sand.u32 (!%p226_p9), 1, %s1523_s22  }
   0xe   : > { %229 = sbr.rel (%p226_p9) target bundleno = 1281 (0x501), region = 44  ;;  %s1313_s17 = sshll.u32 (!%p226_p9), %s257_s16, 5 }
   0xf   : > { %s259_s18 = scalar_lea.vmem (!%p226_p9), [#allocation2], %s1313_s17  ;;  %s1790_s9 = scalar_lea.sflag (!%p226_p9), [#allocation3], %s257_s16 }
  0x10   : > { %s1235_s19 = sshll.u32 (!%p226_p9), %s259_s18, 4  ;;  %s1782_s19 = int_to_ptr.vmem [resolvable:$true] %s1235_s19 }
  0x11   : > { %s1471_s10 = scalar_lea.vmem (!%p226_p9), %s1782_s19, 512 }
  0x12   : > { %p1472_p11 = scmp.ne.s32.totalorder (!%p226_p9), %s1782_s19, %s1471_s10 }
  0x13   : > { %v278_v0 = vld [vmem:[%s1832_s2] sm:$0xff]  ;;  %v876_v1 = vlaneseq  ;;  %v1533_v3 = vmov 0   ;;  %s1630_s11 = scalar_select %p260_p10, %s1596_s25, 1  ;;  %v1534_v4 = vmov 1966171168   ;;  %vm279_vm0 = vcmask 64512  }
  0x14   : > { %v1627_v2 = vand.u32 4294901760, %v278_v0  ;;  %1453 = vset.pattern.permute.xlu0 %v1533_v3  ;;  %1454 = vset.pattern.permute.xlu1 %v1533_v3  ;;  %v874_v5 = vunpack.c.l.s4 %v1534_v4  ;;  %v1652_v10 = vld [vmem:[%s1834_s4] sm:$0xf]  ;;  %vm933_vm1 = vcmask 261120   ;;  %vm1014_vm2 = vcmask 1041409   ;;  %p1473_p12 = pnand %p1472_p11, %p1613_p5 }
  0x15   : > { %v1632_v6 = vshrl.u32 %v876_v1, 7  ;;  %s1327_s12 = sshll.u32 %s1630_s11, 5  ;;  %vm1016_vm3 = vcmask 1042434   ;;  %vm1018_vm4 = vcmask 1043459   ;;  %vm1022_vm5 = vcmask 27648  }
  0x16   : > { %1360 = vmatprep.subr.mxu0 %v1627_v2  ;;  %v1636_v7 = vsub.f32 %v278_v0, %v1627_v2  ;;  %v875_v8 = vunpack.c.0.s8 %v874_v5  ;;  %s269_s15 = scalar_lea.vmem %s1831_s1, %s1327_s12  ;;  %s264_s20 = scalar_lea.vmem %s1830_s0, %s1327_s12  ;;  %vm1042_vm6 = vcmask 1040384   ;;  %vm1044_vm7 = vcmask 25600  }
  0x17   : > { %1361 = vmatpush3.msra.mxu0 %v1627_v2  ;;  %v274_v11 = vld [vmem:[%s269_s15] sm:$0xff]  ;;  %v275_v12 = vld [vmem:[%s269_s15 + $0x8] sm:$0xff]  ;;  %v276_v13 = vld [vmem:[%s269_s15 + $0x10] sm:$0xff]  ;;  %v1674_v27 = vsub.s32 0, %v1632_v6  ;;  %p1474_p13 = pneg %p1473_p12 }
  0x18   : > { %v1641_v9 = vand.u32 4294901760, %v1636_v7  ;;  %1376 = vmatprep.subr.mxu0 %v1636_v7  ;;  %v1655_v14 = vsub.s32 %v875_v8, %v1632_v6  ;;  %v281_v16 = vsel %vm279_vm0, %v274_v11, 0  ;;  %v284_v17 = vsel %vm279_vm0, %v275_v12, 0  ;;  %v277_v19 = vld [vmem:[%s269_s15 + $0x18] sm:$0xff] }
  0x19   : > { %v287_v18 = vsel %vm279_vm0, %v276_v13, 0  ;;  %v1662_v20 = vand.u32 4294901760, %v281_v16  ;;  %v1664_v21 = vand.u32 4294901760, %v284_v17  ;;  %v290_v23 = vsel %vm279_vm0, %v277_v19, 0 }
  0x1a   : > { %v432_v15 = vsub.f32 %v1636_v7, %v1641_v9  ;;  %v1666_v22 = vand.u32 4294901760, %v287_v18  ;;  %v1669_v25 = vand.u32 4294901760, %v290_v23  ;;  %v879_v26 = vrot.slane %v1652_v10, %v1655_v14 }
  0x1b   : > { %v359_v28 = vsub.f32 %v281_v16, %v1662_v20  ;;  %1370 = vmatprep.mubr.f32.mxu1 %v1662_v20  ;;  %v369_v29 = vsub.f32 %v284_v17, %v1664_v21 }
  0x1c   : > { %v433_v24 = vand.u32 4294901760, %v432_v15  ;;  %v379_v30 = vsub.f32 %v287_v18, %v1666_v22  ;;  %v389_v31 = vsub.f32 %v290_v23, %v1669_v25  ;;  %v887_v32 = vrot.slane %v879_v26, %v1655_v14  ;;  %v271_v23 = vld [vmem:[%s264_s20 + $0x8] sm:$0xff] }
  0x1d   : > { %v880_v33 = vcombine.high %v879_v26, %v879_v26  ;;  %v360_v34 = vand.u32 4294901760, %v359_v28  ;;  %v370_v35 = vand.u32 4294901760, %v369_v29 }
  0x1e   : > { %1368 = vmatprep.subr.mxu1 %v433_v24  ;;  %v380_v36 = vand.u32 4294901760, %v379_v30  ;;  %v390_v37 = vand.u32 4294901760, %v389_v31  ;;  %v900_v38 = vrot.slane %v887_v32, %v1674_v27  ;;  %v895_v39 = vcombine.high %v887_v32, %v887_v32 }
  0x1f   : > { %1369 = vmatpush3.msra.mxu1 %v433_v24  ;;  %v894_v40 = vrot.slane %v880_v33, %v1655_v14  ;;  %v361_v41 = vsub.f32 %v359_v28, %v360_v34  ;;  %v371_v42 = vsub.f32 %v369_v29, %v370_v35 }
  0x20   : > { %1371 = vmatmul.mubr.f32.vlgmr.msra.gmra.mxu1 %v1664_v21  ;;  %1384 = vmatprep.subr.mxu1 %v1627_v2  ;;  %v381_v43 = vsub.f32 %v379_v30, %v380_v36  ;;  %v391_v44 = vsub.f32 %v389_v31, %v390_v37  ;;  %v908_v45 = vrot.slane %v895_v39, %v1674_v27 }
  0x21   : > { %1385 = vmatpush3.msra.mxu1 %v1627_v2  ;;  %1373 = vmatprep.mubr.f32.mxu1 %v1666_v22  ;;  %v904_v46 = vrot.slane %v894_v40, %v1674_v27  ;;  %v362_v47 = vand.u32 4294901760, %v361_v41  ;;  %v372_v48 = vand.u32 4294901760, %v371_v42  ;;  %v896_v50 = vcombine.high %v894_v40, %v894_v40 }
  0x22   : > { %1400 = vmatprep.subr.mxu1 %v1627_v2  ;;  %914 = vperm.xlu0 %1453, %v900_v38   ;;  %v382_v49 = vand.u32 4294901760, %v381_v43  ;;  %v392_v51 = vand.u32 4294901760, %v391_v44  ;;  %v272_v43 = vld [vmem:[%s264_s20 + $0x10] sm:$0xff] }
  0x23   : > { %922 = vperm.xlu1 %1454, %v908_v45   ;;  %1362 = vmatprep.mubr.f32.mxu0 %v362_v47  ;;  %v912_v52 = vrot.slane %v896_v50, %v1674_v27 }
  0x24   : > { %1374 = vmatmul.mubr.f32.gmra.mxu1 %v1669_v25  ;;  %1363 = vmatmul.mubr.f32.vlgmr.msra.gmra.mxu0 %v372_v48 }
  0x25   : > { %1386 = vmatprep.mubr.f32.mxu1 %v360_v34  ;;  %1377 = vmatpush3.msra.mxu0 %v1636_v7 }
  0x26   : > { %918 = vperm.xlu0 %1453, %v904_v46   ;;  %1365 = vmatprep.mubr.f32.mxu0 %v382_v49 }
  0x27   : > { %1392 = vmatprep.subr.mxu0 %v1641_v9  ;;  %926 = vperm.xlu1 %1454, %v912_v52  }
  0x28   : > { %1387 = vmatmul.mubr.f32.vlgmr.msra.gmra.mxu1 %v370_v35  ;;  %1366 = vmatmul.mubr.f32.gmra.mxu0 %v392_v51 }
  0x29   : > { %1401 = vmatpush3.msra.mxu1 %v1627_v2  ;;  %1389 = vmatprep.mubr.f32.mxu1 %v380_v36 }
  0x2a   : > { %1378 = vmatprep.mubr.f32.mxu0 %v359_v28 }
  0x2c   : > { %1390 = vmatmul.mubr.f32.gmra.mxu1 %v390_v37  ;;  %1379 = vmatmul.mubr.f32.vlgmr.msra.gmra.mxu0 %v369_v29  ;;  %v273_v37 = vld [vmem:[%s264_s20 + $0x18] sm:$0xff] }
  0x2d   : > { %1402 = vmatprep.mubr.f32.mxu1 %v1662_v20  ;;  %1393 = vmatpush3.msra.mxu0 %v1641_v9 }
  0x2e   : > { %1381 = vmatprep.mubr.f32.mxu0 %v379_v30  ;;  %v270_v30 = vld [vmem:[%s264_s20] sm:$0xff]  ;;  %s1329_s20 = sshll.u32 %s1596_s25, 9  ;;  %s1537_s25 = smov [#allocation2]  }
  0x2f   : > { %s1787_s29 = scalar_lea.hbm %s1836_s6, %s1329_s20  ;;  %s1475_s11 = sshll.u32 %s1537_s25, 4  ;;  %s1476_s11 = int_to_ptr.vmem [resolvable:$false] %s1475_s11 }
  0x30   : > { %1403 = vmatmul.mubr.f32.vlgmr.msra.gmra.mxu1 %v1664_v21  ;;  %1382 = vmatmul.mubr.f32.gmra.mxu0 %v389_v31  ;;  %s1477_s12 = scalar_lea.vmem %s1476_s11, 1024  ;;  %p1478_p0 = scmp.lt.s32.totalorder %s1782_s19, %s1476_s11 }
  0x31   : > { %1405 = vmatprep.mubr.f32.mxu1 %v1666_v22  ;;  %1394 = vmatprep.mubr.f32.mxu0 %v1662_v20  ;;  %p1479_p1 = scmp.lt.s32.totalorder %s1477_s12, %s1471_s10 }
  0x33   : > { %p1480_p2 = por %p1479_p1, %p1478_p0 }
  0x34   : > { %1406 = vmatmul.mubr.f32.gmra.mxu1 %v1669_v25  ;;  %1395 = vmatmul.mubr.f32.vlgmr.msra.gmra.mxu0 %v1664_v21 }
  0x35   : > { %1397 = vmatprep.mubr.f32.mxu0 %v1666_v22  ;;  %p1481_p3 = pnand %p1480_p2, %p1474_p13 }
  0x38   : > { %1398 = vmatmul.mubr.f32.gmra.mxu0 %v1669_v25 }
  0x9d   : > { %v915_v17 = vpop.permute.xlu0 %914 }
  0x9e   : > { %v923_v29 = vpop.permute.xlu1 %922 }
  0xa1   : > { %v919_v38 = vpop.permute.xlu0 %918 }
  0xa2   : > { %v927_v49 = vpop.permute.xlu1 %926 }
  0xe0   : > { %v1372_v53 = vpop.f32.mrf.mxu1 }
  0xe2   : > { %v470_v54 = vpop.f32.mrf.mxu1 }
  0xe4   : > { %v1375_v55 = vpop.f32.mrf.mxu1  ;;  %v1364_v56 = vpop.f32.mrf.mxu0 }
  0xe5   : > { %v477_v2 = vadd.f32 %v1372_v53, %v1364_v56 }
  0xe6   : > { %v482_v57 = vpop.f32.mrf.mxu1  ;;  %v364_v58 = vpop.f32.mrf.mxu0 }
  0xe7   : > { %v471_v4 = vadd.f32 %v470_v54, %v364_v58 }
  0xe8   : > { %v1388_v59 = vpop.f32.mrf.mxu1  ;;  %v1367_v60 = vpop.f32.mrf.mxu0 }
  0xe9   : > { %v489_v9 = vadd.f32 %v1375_v55, %v1367_v60 }
  0xea   : > { %v657_v61 = vpop.f32.mrf.mxu1  ;;  %v384_v62 = vpop.f32.mrf.mxu0 }
  0xeb   : > { %v483_v13 = vadd.f32 %v482_v57, %v384_v62 }
  0xec   : > { %v1391_v63 = vpop.f32.mrf.mxu1  ;;  %v1380_v0 = vpop.f32.mrf.mxu0 }
  0xed   : > { %v570_v5 = vadd.f32 %v1380_v0, %v477_v2 }
  0xee   : > { %v673_v1 = vpop.f32.mrf.mxu1  ;;  %v562_v3 = vpop.f32.mrf.mxu0 }
  0xef   : > { %v563_v11 = vadd.f32 %v562_v3, %v471_v4  ;;  %v666_v15 = vadd.f32 %v1388_v59, %v570_v5 }
  0xf0   : > { %v1383_v7 = vpop.f32.mrf.mxu0  ;;  %v1404_v8 = vpop.f32.mrf.mxu1 }
  0xf1   : > { %v584_v16 = vadd.f32 %v1383_v7, %v489_v9  ;;  %v658_v20 = vadd.f32 %v657_v61, %v563_v11 }
  0xf2   : > { %v576_v12 = vpop.f32.mrf.mxu0  ;;  %v845_v19 = vpop.f32.mrf.mxu1 }
  0xf3   : > { %v577_v21 = vadd.f32 %v576_v12, %v483_v13  ;;  %v682_v25 = vadd.f32 %v1391_v63, %v584_v16 }
  0xf4   : > { %v1396_v18 = vpop.f32.mrf.mxu0  ;;  %v1407_v32 = vpop.f32.mrf.mxu1 }
  0xf5   : > { %v762_v22 = vadd.f32 %v1396_v18, %v666_v15  ;;  %v674_v33 = vadd.f32 %v673_v1, %v577_v21 }
  0xf6   : > { %v755_v24 = vpop.f32.mrf.mxu0  ;;  %v857_v44 = vpop.f32.mrf.mxu1 }
  0xf7   : > { %v852_v26 = vadd.f32 %v1404_v8, %v762_v22  ;;  %v756_v28 = vadd.f32 %v755_v24, %v658_v20 }
  0xf8   : > { %v1399_v31 = vpop.f32.mrf.mxu0 }
  0xf9   : > { %v1710_v34 = vmul.f32 %v852_v26, %v271_v23  ;;  %v846_v35 = vadd.f32 %v845_v19, %v756_v28  ;;  %v774_v36 = vadd.f32 %v1399_v31, %v682_v25 }
  0xfa   : > { %v767_v39 = vpop.f32.mrf.mxu0 }
  0xfb   : > { %v1712_v40 = vmul.f32 %v846_v35, %v270_v30  ;;  %v864_v41 = vadd.f32 %v1407_v32, %v774_v36  ;;  %v768_v42 = vadd.f32 %v767_v39, %v674_v33  ;;  %v930_v47 = vmul.f32 %v919_v38, %v1710_v34 }
  0xfd   : > { %v1714_v45 = vmul.f32 %v864_v41, %v273_v37  ;;  %v929_v46 = vmul.f32 %v915_v17, %v1712_v40  ;;  %v858_v48 = vadd.f32 %v857_v44, %v768_v42  ;;  %v935_v52 = vsel %vm933_vm1, %v930_v47, 0.0 }
  0xff   : > { %v934_v50 = vsel %vm933_vm1, %v929_v46, 0.0  ;;  %v1719_v51 = vmul.f32 %v858_v48, %v272_v43  ;;  %v932_v54 = vmul.f32 %v927_v49, %v1714_v45 }
 0x100   : > { %v936_v55 = vadd.f32 %v935_v52, %v934_v50 }
 0x101   : > { %v931_v53 = vmul.f32 %v923_v29, %v1719_v51  ;;  %v939_v58 = vsel %vm933_vm1, %v932_v54, 0.0 }
 0x103   : > { %v937_v56 = vsel %vm933_vm1, %v931_v53, 0.0 }
 0x104   : > { %v938_v57 = vadd.f32 %v937_v56, %v936_v55 }
 0x106   : > { %v940_v59 = vadd.f32 %v939_v58, %v938_v57 }
 0x108   : > { %v941_v60 = vsel %vm933_vm1, %v940_v59, -inf }
 0x109   : > { %942 = vmax.xlane.f32.xlu0 %v941_v60 }
 0x192   : > { %v943_v61 = vpop.xlane.xlu0 %942 }
 0x193   : > { %v944_v62 = vrot.slane %v943_v61, 4 }
 0x195   : > { %v945_v63 = vmax.f32 %v943_v61, %v944_v62 }
 0x197   : > { %v946_v0 = vrot.slane %v945_v63, 2 }
 0x199   : > { %v947_v1 = vmax.f32 %v945_v63, %v946_v0  ;;  %v1009_v0 = vld [vmem:[%s1835_s5] sm:$0xf] }
 0x19b   : > { %v948_v2 = vrot.slane %v947_v1, 1 }
 0x19d   : > { %v949_v3 = vmax.f32 %v947_v1, %v948_v2  ;;  %v1318_v1 = vld [vmem:[%s1835_s5 + $0x4] sm:$0xf] }
 0x19f   : > { %v950_v4 = vsub.f32 %v940_v59, %v949_v3 }
 0x1a1   : > { %v951_v5 = vmul.f32 1.442695, %v950_v4 }
 0x1a3   : > { %1461 = vpow2.f32 %v951_v5 }
 0x1b0   : > { %v1462_v7 = vpop.eup %1461 }
 0x1b1   : > { %v953_v8 = vsel %vm933_vm1, %v1462_v7, 0.0  ;;  %v962_v9 = vmul.f32 %v1462_v7, %v1712_v40  ;;  %v964_v11 = vmul.f32 %v1462_v7, %v1719_v51  ;;  %v963_v13 = vmul.f32 %v1462_v7, %v1710_v34 }
 0x1b2   : > { %954 = vadd.xlane.f32.xlu1 %v953_v8  ;;  %v965_v17 = vmul.f32 %v1462_v7, %v1714_v45 }
 0x1b3   : > { %v966_v12 = vsel %vm933_vm1, %v962_v9, 0.0  ;;  %v972_v15 = vsel %vm933_vm1, %v964_v11, 0.0  ;;  %v969_v16 = vsel %vm933_vm1, %v963_v13, 0.0 }
 0x1b4   : > { %967 = vadd.xlane.f32.xlu0 %v966_v12  ;;  %v975_v18 = vsel %vm933_vm1, %v965_v17, 0.0 }
 0x1b6   : > { %973 = vadd.xlane.f32.xlu1 %v972_v15 }
 0x1b8   : > { %970 = vadd.xlane.f32.xlu0 %v969_v16 }
 0x1bc   : > { %976 = vadd.xlane.f32.xlu0 %v975_v18 }
 0x23b   : > { %v955_v19 = vpop.xlane.xlu1 %954 }
 0x23c   : > { %v956_v20 = vrot.slane %v955_v19, 4 }
 0x23d   : > { %v968_v21 = vpop.xlane.xlu0 %967 }
 0x23e   : > { %v957_v22 = vadd.f32 %v956_v20, %v955_v19  ;;  %v978_v25 = vrot.slane %v968_v21, 4 }
 0x23f   : > { %v974_v23 = vpop.xlane.xlu1 %973 }
 0x240   : > { %v958_v24 = vrot.slane %v957_v22, 2  ;;  %v990_v26 = vrot.slane %v974_v23, 4  ;;  %v979_v32 = vadd.f32 %v978_v25, %v968_v21 }
 0x241   : > { %v971_v28 = vpop.xlane.xlu0 %970 }
 0x242   : > { %v959_v29 = vadd.f32 %v958_v24, %v957_v22  ;;  %v984_v30 = vrot.slane %v971_v28, 4  ;;  %v991_v33 = vadd.f32 %v990_v26, %v974_v23  ;;  %v980_v39 = vrot.slane %v979_v32, 2  ;;  %v1008_v22 = vld [vmem:[%s1833_s3] sm:$0x3f] }
 0x244   : > { %v960_v31 = vrot.slane %v959_v29, 1  ;;  %v985_v35 = vadd.f32 %v984_v30, %v971_v28  ;;  %v992_v41 = vrot.slane %v991_v33, 2  ;;  %v981_v46 = vadd.f32 %v980_v39, %v979_v32 }
 0x245   : > { %v977_v36 = vpop.xlane.xlu0 %976  ;;  %v1060_v39 = vrot.slane %v1008_v22, 2 }
 0x246   : > { %v961_v37 = vadd.f32 %v960_v31, %v959_v29  ;;  %v996_v38 = vrot.slane %v977_v36, 4  ;;  %v986_v42 = vrot.slane %v985_v35, 2  ;;  %v993_v47 = vadd.f32 %v992_v41, %v991_v33 }
 0x247   : > { %v982_v50 = vrot.slane %v981_v46, 1 }
 0x248   : > { %1463 = vrcp.f32 %v961_v37  ;;  %v997_v43 = vadd.f32 %v996_v38, %v977_v36  ;;  %v987_v48 = vadd.f32 %v986_v42, %v985_v35  ;;  %v994_v52 = vrot.slane %v993_v47, 1 }
 0x249   : > { %v983_v55 = vadd.f32 %v982_v50, %v981_v46  ;;  %v1319_v50 = vld [vmem:[%s1835_s5 + $0x8] sm:$0xf] }
 0x24a   : > { %v998_v44 = vrot.slane %v997_v43, 2  ;;  %v988_v53 = vrot.slane %v987_v48, 1  ;;  %v995_v56 = vadd.f32 %v994_v52, %v993_v47  ;;  %v1088_v47 = vsub.s32 1, %v1632_v6 }
 0x24b   : > { %v1535_v6 = vmov 1  }
 0x24c   : > { %v999_v49 = vadd.f32 %v998_v44, %v997_v43  ;;  %v989_v57 = vadd.f32 %v988_v53, %v987_v48  ;;  %v1063_v43 = vrot.slane %v1008_v22, 4  ;;  %1455 = vset.pattern.permute.xlu1 %v1535_v6  ;;  %1456 = vset.pattern.permute.xlu0 %v1535_v6 }
 0x24e   : > { %v1000_v54 = vrot.slane %v999_v49, 1 }
 0x250   : > { %v1001_v62 = vadd.f32 %v1000_v54, %v999_v49  ;;  %v1321_v49 = vld [vmem:[%s1835_s5 + $0xc] sm:$0xf] }
 0x255   : > { %v1464_v58 = vpop.eup %1463 }
 0x256   : > { %v1004_v59 = vmul.f32 %v1464_v58, %v983_v55  ;;  %v1006_v60 = vmul.f32 %v1464_v58, %v995_v56  ;;  %v1005_v61 = vmul.f32 %v1464_v58, %v989_v57  ;;  %v1007_v2 = vmul.f32 %v1464_v58, %v1001_v62 }
 0x258   : > { %v1015_v63 = vsel %vm1014_vm2, %v1005_v61, %v1004_v59 }
 0x259   : > { %v1017_v3 = vsel %vm1016_vm3, %v1006_v60, %v1015_v63 }
 0x25a   : > { %v1019_v4 = vsel %vm1018_vm4, %v1007_v2, %v1017_v3 }
 0x25b   : > { %v1021_v5 = vmul.f32 %v1019_v4, %v1009_v0  ;;  %v1033_v7 = vmul.f32 %v1318_v1, %v1019_v4 }
 0x25d   : > { %v1023_v8 = vsel %vm1022_vm5, %v1021_v5, 0.0  ;;  %v1034_v9 = vsel %vm1022_vm5, %v1033_v7, 0.0 }
 0x25e   : > { %v1024_v11 = vrot.slane %v1023_v8, 4  ;;  %v1035_v12 = vrot.slane %v1034_v9, 4 }
 0x260   : > { %v1025_v13 = vadd.f32 %v1024_v11, %v1023_v8  ;;  %v1036_v15 = vadd.f32 %v1035_v12, %v1034_v9 }
 0x262   : > { %v1026_v16 = vrot.slane %v1025_v13, 2  ;;  %v1037_v17 = vrot.slane %v1036_v15, 2 }
 0x264   : > { %v1027_v18 = vadd.f32 %v1026_v16, %v1025_v13  ;;  %v1038_v19 = vadd.f32 %v1037_v17, %v1036_v15  ;;  %v1536_v15 = vmov 2  }
 0x266   : > { %v1028_v20 = vrot.slane %v1027_v18, 1  ;;  %v1039_v21 = vrot.slane %v1038_v19, 1 }
 0x268   : > { %v1029_v23 = vadd.f32 %v1028_v20, %v1027_v18  ;;  %v1040_v24 = vadd.f32 %v1039_v21, %v1038_v19 }
 0x26a   : > { %v1030_v25 = vadd.f32 %v1029_v23, %v1008_v22  ;;  %v1041_v26 = vadd.f32 %v1040_v24, %v1008_v22 }
 0x26c   : > { %v1043_v28 = vsel %vm1042_vm6, %v1030_v25, %v1041_v26 }
 0x26d   : > { %v1045_v29 = vsel %vm1044_vm7, %v1043_v28, 0.0 }
 0x26e   : > { %1046 = vadd.xlane.f32.xlu1 %v1045_v29 }
 0x2f7   : > { %v1047_v30 = vpop.xlane.xlu1 %1046 }
 0x2f8   : > { %v1049_v31 = vmul.f32 0.25, %v1047_v30 }
 0x2fa   : > { %v1050_v32 = vsub.f32 %v1043_v28, %v1049_v31 }
 0x2fc   : > { %v1051_v33 = vmul.f32 %v1050_v32, %v1050_v32 }
 0x2fe   : > { %v1052_v35 = vsel %vm1044_vm7, %v1051_v33, 0.0 }
 0x2ff   : > { %1053 = vadd.xlane.f32.xlu0 %v1052_v35 }
 0x388   : > { %v1054_v36 = vpop.xlane.xlu0 %1053 }
 0x389   : > { %v1055_v37 = vmul.f32 0.25, %v1054_v36 }
 0x38b   : > { %v1056_v38 = vadd.f32 1e-05, %v1055_v37 }
 0x38d   : > { %1465 = vrsqrt.f32 %v1056_v38 }
 0x39a   : > { %v1466_v41 = vpop.eup %1465 }
 0x39b   : > { %v1058_v42 = vmul.f32 %v1466_v41, %v1050_v32 }
 0x39d   : > { %v1062_v44 = vmul.f32 %v1060_v39, %v1058_v42 }
 0x39f   : > { %v1065_v46 = vadd.f32 %v1063_v43, %v1062_v44 }
 0x3a1   : > { %v1066_v48 = vmax.f32 %v1065_v46, 0.0 }
 0x3a3   : > { %v1089_v52 = vrot.slane %v1066_v48, %v1088_v47  ;;  %v1072_v53 = vrot.slane %v1066_v48, %v1674_v27 }
 0x3a5   : > { %v1090_v54 = vmul.f32 %v1321_v49, %v1089_v52  ;;  %v1073_v55 = vmul.f32 %v1319_v50, %v1072_v53 }
 0x3a7   : > { %v1091_v56 = vsel %vm1022_vm5, %v1090_v54, 0.0  ;;  %v1074_v57 = vsel %vm1022_vm5, %v1073_v55, 0.0 }
 0x3a8   : > { %1092 = vadd.xlane.f32.xlu0 %v1091_v56  ;;  %1075 = vadd.xlane.f32.xlu1 %v1074_v57 }
 0x431   : > { %v1076_v58 = vpop.xlane.xlu1 %1075  ;;  %v1093_v63 = vpop.xlane.xlu0 %1092 }
 0x432   : > { %v1077_v59 = vadd.f32 %v1076_v58, %v1652_v10  ;;  %v1094_v0 = vadd.f32 %v1093_v63, %v1652_v10 }
 0x434   : > { %v1320_v60 = vmul.f32 -1.442695, %v1077_v59  ;;  %v1163_v3 = vrot.slane %v1094_v0, %v1655_v14 }
 0x436   : > { %1467 = vpow2.f32 %v1320_v60  ;;  %v1164_v9 = vcombine.high %v1163_v3, %v1163_v3  ;;  %v1171_v11 = vrot.slane %v1163_v3, %v1655_v14 }
 0x438   : > { %v1184_v10 = vrot.slane %v1171_v11, %v1674_v27  ;;  %v1178_v13 = vrot.slane %v1164_v9, %v1655_v14  ;;  %v1179_v17 = vcombine.high %v1171_v11, %v1171_v11 }
 0x43a   : > { %v1188_v16 = vrot.slane %v1178_v13, %v1674_v27  ;;  %v1192_v18 = vrot.slane %v1179_v17, %v1674_v27  ;;  %v1180_v22 = vcombine.high %v1178_v13, %v1178_v13 }
 0x43c   : > { %v1196_v23 = vrot.slane %v1180_v22, %v1674_v27 }
 0x443   : > { %v1468_v61 = vpop.eup %1467 }
 0x444   : > { %v1081_v62 = vadd.f32 1.0, %v1468_v61 }
 0x446   : > { %1469 = vrcp.f32 %v1081_v62 }
 0x453   : > { %v1470_v1 = vpop.eup %1469 }
 0x454   : > { %v1102_v2 = vrot.slane %v1470_v1, %v1655_v14 }
 0x456   : > { %v1110_v4 = vrot.slane %v1102_v2, %v1655_v14  ;;  %v1103_v5 = vcombine.high %v1102_v2, %v1102_v2 }
 0x458   : > { %v1123_v7 = vrot.slane %v1110_v4, %v1674_v27  ;;  %v1117_v8 = vrot.slane %v1103_v5, %v1655_v14  ;;  %v1118_v19 = vcombine.high %v1110_v4, %v1110_v4 }
 0x45a   : > { %1137 = vperm.xlu1 %1455, %v1123_v7   ;;  %v1127_v12 = vrot.slane %v1117_v8, %v1674_v27  ;;  %v1131_v20 = vrot.slane %v1118_v19, %v1674_v27  ;;  %v1119_v21 = vcombine.high %v1117_v8, %v1117_v8 }
 0x45c   : > { %1141 = vperm.xlu0 %1456, %v1127_v12   ;;  %v1135_v14 = vrot.slane %v1119_v21, %v1674_v27 }
 0x45e   : > { %1457 = vset.pattern.permute.xlu1 %v1536_v15 }
 0x45f   : > { %1198 = vperm.xlu1 %1457, %v1184_v10  }
 0x460   : > { %1460 = vset.pattern.permute.xlu0 %v1536_v15 }
 0x463   : > { %1202 = vperm.xlu1 %1457, %v1188_v16  }
 0x467   : > { %1206 = vperm.xlu1 %1457, %v1192_v18  }
 0x46b   : > { %1458 = vset.pattern.permute.xlu1 %v1535_v6 }
 0x46c   : > { %1145 = vperm.xlu1 %1458, %v1131_v20  }
 0x470   : > { %1149 = vperm.xlu1 %1458, %v1135_v14  }
 0x474   : > { %1459 = vset.pattern.permute.xlu1 %v1536_v15 }
 0x475   : > { %1210 = vperm.xlu1 %1459, %v1196_v23  }
 0x4d5   : > { %v1138_v24 = vpop.permute.xlu1 %1137 }
 0x4d6   : > { %v1152_v25 = vmul.f32 %v1138_v24, %v1712_v40 }
 0x4d7   : > { %v1142_v26 = vpop.permute.xlu0 %1141 }
 0x4d8   : > { %v1153_v30 = vmul.f32 %v1142_v26, %v1710_v34 }
 0x4da   : > { %v1199_v28 = vpop.permute.xlu1 %1198 }
 0x4db   : > { %v1213_v29 = vadd.f32 %v1199_v28, %v1152_v25 }
 0x4dd   : > { %1217 = vst.msk [vmem:[%s259_s18] sm:$0xff] %vm933_vm1, %v1213_v29 }
 0x4de   : > { %v1203_v31 = vpop.permute.xlu1 %1202 }
 0x4df   : > { %v1214_v32 = vadd.f32 %v1203_v31, %v1153_v30 }
 0x4e1   : > { %1218 = vst.msk [vmem:[%s259_s18 + $0x8] sm:$0xff] %vm933_vm1, %v1214_v32 }
 0x4e2   : > { %v1207_v27 = vpop.permute.xlu1 %1206 }
 0x4e7   : > { %v1146_v33 = vpop.permute.xlu1 %1145 }
 0x4e8   : > { %v1154_v35 = vmul.f32 %v1146_v33, %v1719_v51 }
 0x4ea   : > { %v1215_v36 = vadd.f32 %v1207_v27, %v1154_v35 }
 0x4eb   : > { %v1150_v40 = vpop.permute.xlu1 %1149 }
 0x4ec   : > { %1219 = vst.msk [vmem:[%s259_s18 + $0x10] sm:$0xff] %vm933_vm1, %v1215_v36  ;;  %v1155_v34 = vmul.f32 %v1150_v40, %v1714_v45 }
 0x4f0   : > { %v1211_v37 = vpop.permute.xlu1 %1210 }
 0x4f1   : > { %v1216_v38 = vadd.f32 %v1211_v37, %v1155_v34 }
 0x4f3   : > { %1220 = vst.msk [vmem:[%s259_s18 + $0x18] sm:$0xff] %vm933_vm1, %v1216_v38 }
 0x4f4   : > { %1484 = shalt.err (!%p1481_p3)
}
 0x4f5   : > { %s1485_s13 = scalar_lea.hbm %s1787_s29, 512  ;;  %s1489_s16 = scalar_lea.hbm %s1836_s6, 1024 }
 0x4f6   : > { %p1486_p4 = scmp.ne.s32.totalorder %s1787_s29, %s1485_s13  ;;  %p1490_p9 = scmp.lt.s32.totalorder %s1787_s29, %s1836_s6 }
 0x4f7   : > { %p1491_p10 = scmp.lt.s32.totalorder %s1489_s16, %s1485_s13 }
 0x4f8   : > { %p1487_p7 = pnand %p1486_p4, %p1613_p5 }
 0x4f9   : > { %p1492_p11 = por %p1491_p10, %p1490_p9 }
 0x4fa   : > { %p1488_p8 = pneg %p1487_p7 }
 0x4fc   : > { %p1493_p12 = pnand %p1492_p11, %p1488_p8 }
 0x4fe   : > { %1496 = shalt.err (!%p1493_p12)
}
 0x4ff   : > { %s1538_s20 = smov 128   ;;  %s1539_s26 = smov 8  }
 0x500   : > { %1408 = dma.vmem_to_hbm [thread:$0]  (%p1613_p5), %s1782_s19, 512, %s1787_s29, %s1790_s9, %s1538_s20, %s1538_s20, %s1539_s26  }
 0x501 PF: > { %p1414_p13 = scmp.ge.s32.totalorder %s1531_s24, 2  ;;  %s1250_s28 = sand.u32 1, %s1519_s21  }
 0x502   : > { %s1251_s10 = scalar_lea.sflag [#allocation3], %s1250_s28 }
 0x503   : > { %p1411_p0 = pnand %p1414_p13, %p1617_p6 }
 0x505   : > { %p1412_p1 = pneg %p1411_p0 }
 0x507   : > { %1514 = dma.done.wait (%p1412_p1), %s1251_s10, 512  }
 0x508   : > { %1516 = vsyncadd (%p1412_p1), %s1251_s10, 4294966784  ;;  %p16_p2 = scmp.ge.s32.totalorder %s1600_s27, 4   ;;  %s1839_s21 = smov %s1523_s22 }
 0x509   : > { %s1840_s22 = smov %s1527_s23  ;;  %s1841_s23 = smov %s1611_s30 }
 0x50a   : > { %s1842_s24 = smov %s1600_s27  ;;  %18 = sbr.rel (!%p16_p2) target bundleno = 3 (0x3), region = 85 }
 0x50f   :  { %1256 = vsyncpa [#allocation3], 1 }
 0x510   :  { %1258 = vsyncpa [#allocation3 + $0x1], 1 }

</bundles_post_ra>
